<compile_context>
chip_gen: v5e
topology: v5e:2x2
jax: 0.10.0
libtpu: 0.0.40
codegen_flags: <defaults>
</compile_context>

<pallas_src>
import jax
import jax.numpy as jnp
from jax.experimental import pallas as pl
from jax.experimental.pallas import tpu as pltpu

_MIB = 1024 * 1024
_VMEM_TILE_BUDGET = 40 * _MIB    # budget used when picking block_batch
_MAX_CONVMAT_BYTES = 16 * _MIB   # guard for the dense conv-matrix path


# --------------------------------------------------------------------------- kernel
def _cbam_kernel(x_ref, w1t_ref, w2_ref, cmm_ref, cma_ref, out_ref):
    """One grid step: `Bblk` images with layout (Bblk, C, H*W), H*W on lanes."""
    x = x_ref[...].astype(jnp.float32)                    # (Bblk, C, HW)
    bblk, C, HW = x.shape
    Cr = w1t_ref.shape[1]

    # ---------------- Channel gate (global pools + tiny MLP on the VPU) ----------
    maxp = jnp.max(x, axis=-1, keepdims=True)             # (Bblk, C, 1)  lane reduce
    avgp = jnp.sum(x, axis=-1, keepdims=True) * (1.0 / HW)

    w1t = w1t_ref[...].astype(jnp.float32)                # (C, Cr) == w1.T
    w2 = w2_ref[...].astype(jnp.float32)                  # (C, Cr)

    o = jnp.zeros((bblk, C, 1), jnp.float32)
    for r in range(Cr):                                   # tiny, fully unrolled
        w1r = w1t[:, r:r + 1]                             # (C, 1)
        hmax = jnp.maximum(
            jnp.sum(w1r * maxp, axis=1, keepdims=True), 0.0)   # (Bblk, 1, 1)
        havg = jnp.maximum(
            jnp.sum(w1r * avgp, axis=1, keepdims=True), 0.0)   # (Bblk, 1, 1)
        o = o + w2[:, r:r + 1] * (hmax + havg)            # (Bblk, C, 1)
    cattn = jax.nn.sigmoid(o)                             # (Bblk, C, 1)
    y = x * cattn                                         # (Bblk, C, HW)

    # ---------------- Spatial gate (vectorized pools + conv as two MXU matmuls) --
    smax = jnp.max(y, axis=1)                             # (Bblk, HW)  sublane reduce
    smean = jnp.sum(y, axis=1) * (1.0 / C)                # (Bblk, HW)

    cmm = cmm_ref[...]                                    # (HW, HW) bf16, max branch
    cma = cma_ref[...]                                    # (HW, HW) bf16, mean branch
    conv = (jnp.dot(smax.astype(cmm.dtype), cmm, preferred_element_type=jnp.float32)
            + jnp.dot(smean.astype(cma.dtype), cma, preferred_element_type=jnp.float32))
    sattn = jax.nn.sigmoid(conv)                          # (Bblk, HW)

    # ---------------- apply + residual: one fused lane-dense store ----------------
    out_ref[...] = (y * sattn[:, None, :] + x).astype(out_ref.dtype)


# ------------------------------------------------------------------- host helpers
def _build_conv_matrices(w_spatial, H, W, eps=1e-5, dtype=jnp.bfloat16):
    """Dense (HW, HW) matrices equivalent to Conv2d(2, 1, k, pad=k//2, bias=False)
    + eval-mode BatchNorm2d(1) with identity stats, split into the contributions of
    the max map (rows 0..HW-1 of the basis) and the mean map."""
    k = w_spatial.shape[-1]
    p = k // 2
    HW = H * W
    basis = jnp.eye(2 * HW, dtype=jnp.float32).reshape(2 * HW, 2, H, W)
    resp = jax.lax.conv_general_dilated(
        basis, w_spatial.astype(jnp.float32),
        window_strides=(1, 1), padding=((p, p), (p, p)),
        dimension_numbers=("NCHW", "OIHW", "NCHW"))        # (2*HW, 1, H, W)
    bn_scale = 1.0 / jnp.sqrt(1.0 + eps)
    m = resp.reshape(2 * HW, HW) * bn_scale
    return m[:HW].astype(dtype), m[HW:].astype(dtype)


def _step_vmem_bytes(bb, C, HW, itemsize):
    block = bb * C * HW
    # double-buffered in + out blocks (native dtype) + ~3 full-size f32 temps (x, y, slack)
    return 4 * block * itemsize + 3 * block * 4


def _pick_block_batch(B, C, HW, itemsize, resident_bytes):
    budget = max(_VMEM_TILE_BUDGET - resident_bytes, 2 * _MIB)
    divisors = [d for d in range(1, B + 1) if B % d == 0]
    fits = [d for d in divisors if _step_vmem_bytes(d, C, HW, itemsize) <= budget]
    if not fits:
        return 1
    # Prefer >= 2 grid steps so the "parallel" batch axis can shard across the two
    # v7x TensorCores; among those pick the largest block to amortize per-step cost.
    multi = [d for d in fits if B // d >= 2]
    return max(multi) if multi else max(fits)


def _nbytes(a):
    return int(a.size) * jnp.dtype(a.dtype).itemsize


# ------------------------------------------------------------------------ wrapper
def make_cbam_forward(w1, w2, w_spatial, H, W, *, block_batch=None):
    """Precompute grid-invariant operands once (conv matrices, transposed MLP weight)
    and return a forward function x -> CBAM(x).

    w1: (C//r, C) weight of Conv2d(C, C//r, 1, bias=False)
    w2: (C, C//r) weight of Conv2d(C//r, C, 1, bias=False)
    w_spatial: (1, 2, k, k) weight of the spatial Conv2d(2, 1, k, bias=False)
    """
    Cr, C = w1.shape
    HW = H * W

    conv_bytes = 2 * HW * HW * 2  # two bf16 (HW, HW) matrices
    if conv_bytes > _MAX_CONVMAT_BYTES:
        # TODO(synk): tiled / tap-based spatial conv for large feature maps.
        raise NotImplementedError("H*W too large for the dense conv-matrix spatial gate")

    w1t = jnp.asarray(w1, jnp.float32).T                   # (C, Cr)
    w2c = jnp.asarray(w2, jnp.float32)                     # (C, Cr)
    cmm, cma = _build_conv_matrices(w_spatial, H, W)       # (HW, HW) bf16 each

    # Conservatively count the grid-invariant operands as double-buffered when sizing.
    resident = 2 * (_nbytes(cmm) + _nbytes(cma) + _nbytes(w1t) + _nbytes(w2c))

    def forward(x):
        B, C_, H_, W_ = x.shape
        assert (C_, H_, W_) == (C, H, W), "input shape does not match weights"
        itemsize = jnp.dtype(x.dtype).itemsize

        bb = block_batch if block_batch is not None else _pick_block_batch(
            B, C, HW, itemsize, resident)
        assert B % bb == 0

        need = _step_vmem_bytes(bb, C, HW, itemsize) + resident
        vmem_limit = int(min(64 * _MIB, max(32 * _MIB, need + 8 * _MIB)))

        x3 = x.reshape(B, C, HW)                           # lane-dense view

        def run(single_buffer_consts):
            def const_spec(shape):
                if single_buffer_consts:
                    return pl.BlockSpec(shape, lambda b: (0, 0),
                                        pipeline_mode=pl.Buffered(1))
                return pl.BlockSpec(shape, lambda b: (0, 0))

            return pl.pallas_call(
                _cbam_kernel,
                out_shape=jax.ShapeDtypeStruct((B, C, HW), x.dtype),
                grid_spec=pltpu.PrefetchScalarGridSpec(
                    num_scalar_prefetch=0,
                    grid=(B // bb,),
                    in_specs=[
                        pl.BlockSpec((bb, C, HW), lambda b: (b, 0, 0)),
                        const_spec((C, Cr)),
                        const_spec((C, Cr)),
                        const_spec((HW, HW)),
                        const_spec((HW, HW)),
                    ],
                    out_specs=pl.BlockSpec((bb, C, HW), lambda b: (b, 0, 0)),
                ),
                compiler_params=pltpu.CompilerParams(
                    dimension_semantics=("parallel",),
                    vmem_limit_bytes=vmem_limit),
            )(x3, w1t, w2c, cmm, cma)

        try:
            out3 = run(True)        # single-buffered grid-invariant operands
        except Exception:           # fallback: default double-buffered specs
            out3 = run(False)
        return out3.reshape(B, C, H, W)

    return forward


def cbam_forward(x, w1, w2, w_spatial, *, block_batch=None):
    """One-shot convenience wrapper (prefer make_cbam_forward to cache the conv matrices)."""
    _, _, H, W = x.shape
    return make_cbam_forward(w1, w2, w_spatial, H, W, block_batch=block_batch)(x)


# ---------------------------------------------------------------------- reference
def cbam_ref(x, w1, w2, w_spatial, *, kernel_size=7):
    """Pure-JAX f32 reference of the same forward (eval-mode BN, channel_first)."""
    p = kernel_size // 2
    maxp = jnp.max(x, axis=(2, 3), keepdims=True)
    avgp = jnp.mean(x, axis=(2, 3), keepdims=True)

    def mlp(v):
        h = jnp.einsum('rc,bcij->brij', w1, v)
        h = jnp.maximum(h, 0.0)
        return jnp.einsum('cr,brij->bcij', w2, h)

    cattn = jax.nn.sigmoid(mlp(maxp) + mlp(avgp))
    y = x * cattn

    smax = jnp.max(y, axis=1, keepdims=True)
    smean = jnp.mean(y, axis=1, keepdims=True)
    s = jnp.concatenate([smax, smean], axis=1)
    conv = jax.lax.conv_general_dilated(
        s, w_spatial, window_strides=(1, 1), padding=((p, p), (p, p)),
        dimension_numbers=('NCHW', 'OIHW', 'NCHW'))
    conv = conv / jnp.sqrt(1.0 + 1e-5)
    sattn = jax.nn.sigmoid(conv)
    return y * sattn + x


if __name__ == "__main__":
    B, C, H, W = 2, 32, 16, 16
    reduction = 16
    Cr = C // reduction
    ksize = 7

    key = jax.random.PRNGKey(0)
    kx, k1, k2, k3 = jax.random.split(key, 4)
    x = jax.random.normal(kx, (B, C, H, W), jnp.float32)
    # Conv2d(C, C//r, 1, bias=False) weight, squeezed to (C//r, C)
    w1 = 0.1 * jax.random.normal(k1, (Cr, C), jnp.float32)
    # Conv2d(C//r, C, 1, bias=False) weight, squeezed to (C, C//r)
    w2 = 0.1 * jax.random.normal(k2, (C, Cr), jnp.float32)
    # Conv2d(2, 1, 7, padding=3, bias=False) weight: (1, 2, 7, 7)
    w_sp = 0.1 * jax.random.normal(k3, (1, 2, ksize, ksize), jnp.float32)

    fwd = make_cbam_forward(w1, w2, w_sp, H, W)
    out = fwd(x)
    jax.block_until_ready(out)

    ref = cbam_ref(x, w1, w2, w_sp, kernel_size=ksize)
    assert out.shape == (B, C, H, W)
    # Spatial conv runs on the MXU with bf16 operands -> compare at a bf16-appropriate
    # tolerance against the f32 reference.
    assert jnp.allclose(out, ref, atol=2e-2, rtol=2e-2), "mismatch vs reference"
    print("KERNEL_OK")
</pallas_src>

<mosaic_0001>
module attributes {stable_mosaic.version = 11 : i64} {
  func.func @_cbam_kernel(%arg0: i32, %arg1: memref<1x32x256xf32, #tpu.memory_space<vmem>>, %arg2: memref<32x2xf32, #tpu.memory_space<vmem>>, %arg3: memref<32x2xf32, #tpu.memory_space<vmem>>, %arg4: memref<256x256xbf16, #tpu.memory_space<vmem>>, %arg5: memref<256x256xbf16, #tpu.memory_space<vmem>>, %arg6: memref<1x32x256xf32, #tpu.memory_space<vmem>>) attributes {dimension_semantics = [#tpu.dimension_semantics<parallel>], iteration_bounds = array<i64: 2>, scalar_prefetch = 0 : i64, scratch_operands = 0 : i64, tpu.core_type = #tpu.core_type<tc>, window_params = [{transform_indices = @transform_0, window_bounds = array<i64: 1, 32, 256>}, {pipeline_mode = #tpu.pipeline_mode<synchronous>, transform_indices = @transform_1, window_bounds = array<i64: 32, 2>}, {pipeline_mode = #tpu.pipeline_mode<synchronous>, transform_indices = @transform_2, window_bounds = array<i64: 32, 2>}, {pipeline_mode = #tpu.pipeline_mode<synchronous>, transform_indices = @transform_3, window_bounds = array<i64: 256, 256>}, {pipeline_mode = #tpu.pipeline_mode<synchronous>, transform_indices = @transform_4, window_bounds = array<i64: 256, 256>}, {transform_indices = @transform_5, window_bounds = array<i64: 1, 32, 256>}]} {
    %c0 = arith.constant 0 : index
    %c0_0 = arith.constant 0 : index
    %c0_1 = arith.constant 0 : index
    %0 = vector.load %arg1[%c0, %c0_0, %c0_1] : memref<1x32x256xf32, #tpu.memory_space<vmem>>, vector<1x32x256xf32>
    %cst = arith.constant dense<0xFF800000> : vector<1x32xf32>
    %1 = vector.multi_reduction <maximumf>, %0, %cst [2] : vector<1x32x256xf32> to vector<1x32xf32>
    %2 = vector.shape_cast %1 : vector<1x32xf32> to vector<1x32x1xf32>
    %cst_2 = arith.constant dense<0.000000e+00> : vector<1x32xf32>
    %3 = vector.multi_reduction <add>, %0, %cst_2 [2] : vector<1x32x256xf32> to vector<1x32xf32>
    %4 = vector.shape_cast %3 : vector<1x32xf32> to vector<1x32x1xf32>
    %cst_3 = arith.constant 3.906250e-03 : f32
    %5 = vector.broadcast %cst_3 : f32 to vector<1x32x1xf32>
    %6 = arith.mulf %4, %5 : vector<1x32x1xf32>
    %c0_4 = arith.constant 0 : index
    %c0_5 = arith.constant 0 : index
    %7 = vector.load %arg2[%c0_4, %c0_5] : memref<32x2xf32, #tpu.memory_space<vmem>>, vector<32x2xf32>
    %c0_6 = arith.constant 0 : index
    %c0_7 = arith.constant 0 : index
    %8 = vector.load %arg3[%c0_6, %c0_7] : memref<32x2xf32, #tpu.memory_space<vmem>>, vector<32x2xf32>
    %cst_8 = arith.constant 0.000000e+00 : f32
    %9 = vector.broadcast %cst_8 : f32 to vector<1x32x1xf32>
    %10 = vector.extract_strided_slice %7 {offsets = [0, 0], sizes = [32, 1], strides = [1, 1]} : vector<32x2xf32> to vector<32x1xf32>
    %11 = vector.shape_cast %10 : vector<32x1xf32> to vector<1x32x1xf32>
    %12 = arith.mulf %11, %2 : vector<1x32x1xf32>
    %cst_9 = arith.constant dense<0.000000e+00> : vector<1x1xf32>
    %13 = vector.multi_reduction <add>, %12, %cst_9 [1] : vector<1x32x1xf32> to vector<1x1xf32>
    %14 = vector.shape_cast %13 : vector<1x1xf32> to vector<1x1x1xf32>
    %cst_10 = arith.constant 0.000000e+00 : f32
    %15 = vector.broadcast %cst_10 : f32 to vector<1x1x1xf32>
    %16 = arith.maximumf %14, %15 : vector<1x1x1xf32>
    %17 = vector.shape_cast %10 : vector<32x1xf32> to vector<1x32x1xf32>
    %18 = arith.mulf %17, %6 : vector<1x32x1xf32>
    %cst_11 = arith.constant dense<0.000000e+00> : vector<1x1xf32>
    %19 = vector.multi_reduction <add>, %18, %cst_11 [1] : vector<1x32x1xf32> to vector<1x1xf32>
    %20 = vector.shape_cast %19 : vector<1x1xf32> to vector<1x1x1xf32>
    %cst_12 = arith.constant 0.000000e+00 : f32
    %21 = vector.broadcast %cst_12 : f32 to vector<1x1x1xf32>
    %22 = arith.maximumf %20, %21 : vector<1x1x1xf32>
    %23 = vector.extract_strided_slice %8 {offsets = [0, 0], sizes = [32, 1], strides = [1, 1]} : vector<32x2xf32> to vector<32x1xf32>
    %24 = arith.addf %16, %22 : vector<1x1x1xf32>
    %25 = vector.shape_cast %23 : vector<32x1xf32> to vector<1x32x1xf32>
    %26 = vector.broadcast %24 : vector<1x1x1xf32> to vector<1x32x1xf32>
    %27 = arith.mulf %25, %26 : vector<1x32x1xf32>
    %28 = arith.addf %9, %27 : vector<1x32x1xf32>
    %29 = vector.extract_strided_slice %7 {offsets = [0, 1], sizes = [32, 1], strides = [1, 1]} : vector<32x2xf32> to vector<32x1xf32>
    %30 = vector.shape_cast %29 : vector<32x1xf32> to vector<1x32x1xf32>
    %31 = arith.mulf %30, %2 : vector<1x32x1xf32>
    %cst_13 = arith.constant dense<0.000000e+00> : vector<1x1xf32>
    %32 = vector.multi_reduction <add>, %31, %cst_13 [1] : vector<1x32x1xf32> to vector<1x1xf32>
    %33 = vector.shape_cast %32 : vector<1x1xf32> to vector<1x1x1xf32>
    %cst_14 = arith.constant 0.000000e+00 : f32
    %34 = vector.broadcast %cst_14 : f32 to vector<1x1x1xf32>
    %35 = arith.maximumf %33, %34 : vector<1x1x1xf32>
    %36 = vector.shape_cast %29 : vector<32x1xf32> to vector<1x32x1xf32>
    %37 = arith.mulf %36, %6 : vector<1x32x1xf32>
    %cst_15 = arith.constant dense<0.000000e+00> : vector<1x1xf32>
    %38 = vector.multi_reduction <add>, %37, %cst_15 [1] : vector<1x32x1xf32> to vector<1x1xf32>
    %39 = vector.shape_cast %38 : vector<1x1xf32> to vector<1x1x1xf32>
    %cst_16 = arith.constant 0.000000e+00 : f32
    %40 = vector.broadcast %cst_16 : f32 to vector<1x1x1xf32>
    %41 = arith.maximumf %39, %40 : vector<1x1x1xf32>
    %42 = vector.extract_strided_slice %8 {offsets = [0, 1], sizes = [32, 1], strides = [1, 1]} : vector<32x2xf32> to vector<32x1xf32>
    %43 = arith.addf %35, %41 : vector<1x1x1xf32>
    %44 = vector.shape_cast %42 : vector<32x1xf32> to vector<1x32x1xf32>
    %45 = vector.broadcast %43 : vector<1x1x1xf32> to vector<1x32x1xf32>
    %46 = arith.mulf %44, %45 : vector<1x32x1xf32>
    %47 = arith.addf %28, %46 : vector<1x32x1xf32>
    %48 = arith.negf %47 : vector<1x32x1xf32>
    %49 = math.exp %48 : vector<1x32x1xf32>
    %cst_17 = arith.constant 1.000000e+00 : f32
    %50 = vector.broadcast %cst_17 : f32 to vector<1x32x1xf32>
    %51 = arith.addf %50, %49 : vector<1x32x1xf32>
    %52 = arith.divf %50, %51 : vector<1x32x1xf32>
    %53 = vector.broadcast %52 : vector<1x32x1xf32> to vector<1x32x256xf32>
    %54 = arith.mulf %0, %53 : vector<1x32x256xf32>
    %cst_18 = arith.constant dense<0xFF800000> : vector<1x256xf32>
    %55 = vector.multi_reduction <maximumf>, %54, %cst_18 [1] : vector<1x32x256xf32> to vector<1x256xf32>
    %cst_19 = arith.constant dense<0.000000e+00> : vector<1x256xf32>
    %56 = vector.multi_reduction <add>, %54, %cst_19 [1] : vector<1x32x256xf32> to vector<1x256xf32>
    %cst_20 = arith.constant 3.125000e-02 : f32
    %57 = vector.broadcast %cst_20 : f32 to vector<1x256xf32>
    %58 = arith.mulf %56, %57 : vector<1x256xf32>
    %c0_21 = arith.constant 0 : index
    %c0_22 = arith.constant 0 : index
    %59 = vector.load %arg4[%c0_21, %c0_22] : memref<256x256xbf16, #tpu.memory_space<vmem>>, vector<256x256xbf16>
    %c0_23 = arith.constant 0 : index
    %c0_24 = arith.constant 0 : index
    %60 = vector.load %arg5[%c0_23, %c0_24] : memref<256x256xbf16, #tpu.memory_space<vmem>>, vector<256x256xbf16>
    %61 = arith.truncf %55 : vector<1x256xf32> to vector<1x256xbf16>
    %cst_25 = arith.constant dense<0.000000e+00> : vector<1x256xf32>
    %62 = tpu.matmul %61, %59, %cst_25 {dimension_numbers = #tpu.dot_dimension_numbers<[1], [0], [0], [1], [0, 0, 1, 1], [], []>} : vector<1x256xbf16>, vector<256x256xbf16>, vector<1x256xf32> -> vector<1x256xf32>
    %63 = arith.truncf %58 : vector<1x256xf32> to vector<1x256xbf16>
    %cst_26 = arith.constant dense<0.000000e+00> : vector<1x256xf32>
    %64 = tpu.matmul %63, %60, %cst_26 {dimension_numbers = #tpu.dot_dimension_numbers<[1], [0], [0], [1], [0, 0, 1, 1], [], []>} : vector<1x256xbf16>, vector<256x256xbf16>, vector<1x256xf32> -> vector<1x256xf32>
    %65 = arith.addf %62, %64 : vector<1x256xf32>
    %66 = arith.negf %65 : vector<1x256xf32>
    %67 = math.exp %66 : vector<1x256xf32>
    %cst_27 = arith.constant 1.000000e+00 : f32
    %68 = vector.broadcast %cst_27 : f32 to vector<1x256xf32>
    %69 = arith.addf %68, %67 : vector<1x256xf32>
    %70 = arith.divf %68, %69 : vector<1x256xf32>
    %71 = vector.shape_cast %70 : vector<1x256xf32> to vector<1x1x256xf32>
    %72 = vector.broadcast %71 : vector<1x1x256xf32> to vector<1x32x256xf32>
    %73 = arith.mulf %54, %72 : vector<1x32x256xf32>
    %74 = arith.addf %73, %0 : vector<1x32x256xf32>
    %c0_28 = arith.constant 0 : index
    %c0_29 = arith.constant 0 : index
    %c0_30 = arith.constant 0 : index
    %75 = vector.load %arg6[%c0_28, %c0_29, %c0_30] : memref<1x32x256xf32, #tpu.memory_space<vmem>>, vector<1x32x256xf32>
    tpu.vector_store %arg6[%c0_28, %c0_29, %c0_30], %74 {strides = array<i32>} : memref<1x32x256xf32, #tpu.memory_space<vmem>>, vector<1x32x256xf32>,
    return
  }
  func.func @transform_0(%arg0: i32) -> (i32, i32, i32) {
    %c0_i32 = arith.constant 0 : i32
    %c0_i32_0 = arith.constant 0 : i32
    %c0_i32_1 = arith.constant 0 : i32
    return %arg0, %c0_i32, %c0_i32_0 : i32, i32, i32
  }
  func.func @transform_1(%arg0: i32) -> (i32, i32) {
    %c0_i32 = arith.constant 0 : i32
    %c0_i32_0 = arith.constant 0 : i32
    %c0_i32_1 = arith.constant 0 : i32
    return %c0_i32, %c0_i32_0 : i32, i32
  }
  func.func @transform_2(%arg0: i32) -> (i32, i32) {
    %c0_i32 = arith.constant 0 : i32
    %c0_i32_0 = arith.constant 0 : i32
    %c0_i32_1 = arith.constant 0 : i32
    return %c0_i32, %c0_i32_0 : i32, i32
  }
  func.func @transform_3(%arg0: i32) -> (i32, i32) {
    %c0_i32 = arith.constant 0 : i32
    %c0_i32_0 = arith.constant 0 : i32
    %c0_i32_1 = arith.constant 0 : i32
    return %c0_i32, %c0_i32_0 : i32, i32
  }
  func.func @transform_4(%arg0: i32) -> (i32, i32) {
    %c0_i32 = arith.constant 0 : i32
    %c0_i32_0 = arith.constant 0 : i32
    %c0_i32_1 = arith.constant 0 : i32
    return %c0_i32, %c0_i32_0 : i32, i32
  }
  func.func @transform_5(%arg0: i32) -> (i32, i32, i32) {
    %c0_i32 = arith.constant 0 : i32
    %c0_i32_0 = arith.constant 0 : i32
    %c0_i32_1 = arith.constant 0 : i32
    return %arg0, %c0_i32, %c0_i32_0 : i32, i32, i32
  }
}

module attributes {stable_mosaic.version = 11 : i64} {
  func.func @_cbam_kernel(%arg0: i32, %arg1: memref<1x32x256xf32, #tpu.memory_space<vmem>>, %arg2: memref<32x2xf32, #tpu.memory_space<vmem>>, %arg3: memref<32x2xf32, #tpu.memory_space<vmem>>, %arg4: memref<256x256xbf16, #tpu.memory_space<vmem>>, %arg5: memref<256x256xbf16, #tpu.memory_space<vmem>>, %arg6: memref<1x32x256xf32, #tpu.memory_space<vmem>>) attributes {dimension_semantics = [#tpu.dimension_semantics<parallel>], iteration_bounds = array<i64: 2>, scalar_prefetch = 0 : i64, scratch_operands = 0 : i64, tpu.core_type = #tpu.core_type<tc>, window_params = [{transform_indices = @transform_0, window_bounds = array<i64: 1, 32, 256>}, {pipeline_mode = #tpu.pipeline_mode<synchronous>, transform_indices = @transform_1, window_bounds = array<i64: 32, 2>}, {pipeline_mode = #tpu.pipeline_mode<synchronous>, transform_indices = @transform_2, window_bounds = array<i64: 32, 2>}, {pipeline_mode = #tpu.pipeline_mode<synchronous>, transform_indices = @transform_3, window_bounds = array<i64: 256, 256>}, {pipeline_mode = #tpu.pipeline_mode<synchronous>, transform_indices = @transform_4, window_bounds = array<i64: 256, 256>}, {transform_indices = @transform_5, window_bounds = array<i64: 1, 32, 256>}]} {
    %c0 = arith.constant 0 : index
    %c0_0 = arith.constant 0 : index
    %c0_1 = arith.constant 0 : index
    %0 = vector.load %arg1[%c0, %c0_0, %c0_1] : memref<1x32x256xf32, #tpu.memory_space<vmem>>, vector<1x32x256xf32>
    %cst = arith.constant dense<0xFF800000> : vector<1x32xf32>
    %1 = vector.multi_reduction <maximumf>, %0, %cst [2] : vector<1x32x256xf32> to vector<1x32xf32>
    %2 = vector.shape_cast %1 : vector<1x32xf32> to vector<1x32x1xf32>
    %cst_2 = arith.constant dense<0.000000e+00> : vector<1x32xf32>
    %3 = vector.multi_reduction <add>, %0, %cst_2 [2] : vector<1x32x256xf32> to vector<1x32xf32>
    %4 = vector.shape_cast %3 : vector<1x32xf32> to vector<1x32x1xf32>
    %cst_3 = arith.constant 3.906250e-03 : f32
    %5 = vector.broadcast %cst_3 : f32 to vector<1x32x1xf32>
    %6 = arith.mulf %4, %5 : vector<1x32x1xf32>
    %c0_4 = arith.constant 0 : index
    %c0_5 = arith.constant 0 : index
    %7 = vector.load %arg2[%c0_4, %c0_5] : memref<32x2xf32, #tpu.memory_space<vmem>>, vector<32x2xf32>
    %c0_6 = arith.constant 0 : index
    %c0_7 = arith.constant 0 : index
    %8 = vector.load %arg3[%c0_6, %c0_7] : memref<32x2xf32, #tpu.memory_space<vmem>>, vector<32x2xf32>
    %cst_8 = arith.constant 0.000000e+00 : f32
    %9 = vector.broadcast %cst_8 : f32 to vector<1x32x1xf32>
    %10 = vector.extract_strided_slice %7 {offsets = [0, 0], sizes = [32, 1], strides = [1, 1]} : vector<32x2xf32> to vector<32x1xf32>
    %11 = vector.shape_cast %10 : vector<32x1xf32> to vector<1x32x1xf32>
    %12 = arith.mulf %11, %2 : vector<1x32x1xf32>
    %cst_9 = arith.constant dense<0.000000e+00> : vector<1x1xf32>
    %13 = vector.multi_reduction <add>, %12, %cst_9 [1] : vector<1x32x1xf32> to vector<1x1xf32>
    %14 = vector.shape_cast %13 : vector<1x1xf32> to vector<1x1x1xf32>
    %cst_10 = arith.constant 0.000000e+00 : f32
    %15 = vector.broadcast %cst_10 : f32 to vector<1x1x1xf32>
    %16 = arith.maximumf %14, %15 : vector<1x1x1xf32>
    %17 = vector.shape_cast %10 : vector<32x1xf32> to vector<1x32x1xf32>
    %18 = arith.mulf %17, %6 : vector<1x32x1xf32>
    %cst_11 = arith.constant dense<0.000000e+00> : vector<1x1xf32>
    %19 = vector.multi_reduction <add>, %18, %cst_11 [1] : vector<1x32x1xf32> to vector<1x1xf32>
    %20 = vector.shape_cast %19 : vector<1x1xf32> to vector<1x1x1xf32>
    %cst_12 = arith.constant 0.000000e+00 : f32
    %21 = vector.broadcast %cst_12 : f32 to vector<1x1x1xf32>
    %22 = arith.maximumf %20, %21 : vector<1x1x1xf32>
    %23 = vector.extract_strided_slice %8 {offsets = [0, 0], sizes = [32, 1], strides = [1, 1]} : vector<32x2xf32> to vector<32x1xf32>
    %24 = arith.addf %16, %22 : vector<1x1x1xf32>
    %25 = vector.shape_cast %23 : vector<32x1xf32> to vector<1x32x1xf32>
    %26 = vector.broadcast %24 : vector<1x1x1xf32> to vector<1x32x1xf32>
    %27 = arith.mulf %25, %26 : vector<1x32x1xf32>
    %28 = arith.addf %9, %27 : vector<1x32x1xf32>
    %29 = vector.extract_strided_slice %7 {offsets = [0, 1], sizes = [32, 1], strides = [1, 1]} : vector<32x2xf32> to vector<32x1xf32>
    %30 = vector.shape_cast %29 : vector<32x1xf32> to vector<1x32x1xf32>
    %31 = arith.mulf %30, %2 : vector<1x32x1xf32>
    %cst_13 = arith.constant dense<0.000000e+00> : vector<1x1xf32>
    %32 = vector.multi_reduction <add>, %31, %cst_13 [1] : vector<1x32x1xf32> to vector<1x1xf32>
    %33 = vector.shape_cast %32 : vector<1x1xf32> to vector<1x1x1xf32>
    %cst_14 = arith.constant 0.000000e+00 : f32
    %34 = vector.broadcast %cst_14 : f32 to vector<1x1x1xf32>
    %35 = arith.maximumf %33, %34 : vector<1x1x1xf32>
    %36 = vector.shape_cast %29 : vector<32x1xf32> to vector<1x32x1xf32>
    %37 = arith.mulf %36, %6 : vector<1x32x1xf32>
    %cst_15 = arith.constant dense<0.000000e+00> : vector<1x1xf32>
    %38 = vector.multi_reduction <add>, %37, %cst_15 [1] : vector<1x32x1xf32> to vector<1x1xf32>
    %39 = vector.shape_cast %38 : vector<1x1xf32> to vector<1x1x1xf32>
    %cst_16 = arith.constant 0.000000e+00 : f32
    %40 = vector.broadcast %cst_16 : f32 to vector<1x1x1xf32>
    %41 = arith.maximumf %39, %40 : vector<1x1x1xf32>
    %42 = vector.extract_strided_slice %8 {offsets = [0, 1], sizes = [32, 1], strides = [1, 1]} : vector<32x2xf32> to vector<32x1xf32>
    %43 = arith.addf %35, %41 : vector<1x1x1xf32>
    %44 = vector.shape_cast %42 : vector<32x1xf32> to vector<1x32x1xf32>
    %45 = vector.broadcast %43 : vector<1x1x1xf32> to vector<1x32x1xf32>
    %46 = arith.mulf %44, %45 : vector<1x32x1xf32>
    %47 = arith.addf %28, %46 : vector<1x32x1xf32>
    %48 = arith.negf %47 : vector<1x32x1xf32>
    %49 = math.exp %48 : vector<1x32x1xf32>
    %cst_17 = arith.constant 1.000000e+00 : f32
    %50 = vector.broadcast %cst_17 : f32 to vector<1x32x1xf32>
    %51 = arith.addf %50, %49 : vector<1x32x1xf32>
    %52 = arith.divf %50, %51 : vector<1x32x1xf32>
    %53 = vector.broadcast %52 : vector<1x32x1xf32> to vector<1x32x256xf32>
    %54 = arith.mulf %0, %53 : vector<1x32x256xf32>
    %cst_18 = arith.constant dense<0xFF800000> : vector<1x256xf32>
    %55 = vector.multi_reduction <maximumf>, %54, %cst_18 [1] : vector<1x32x256xf32> to vector<1x256xf32>
    %cst_19 = arith.constant dense<0.000000e+00> : vector<1x256xf32>
    %56 = vector.multi_reduction <add>, %54, %cst_19 [1] : vector<1x32x256xf32> to vector<1x256xf32>
    %cst_20 = arith.constant 3.125000e-02 : f32
    %57 = vector.broadcast %cst_20 : f32 to vector<1x256xf32>
    %58 = arith.mulf %56, %57 : vector<1x256xf32>
    %c0_21 = arith.constant 0 : index
    %c0_22 = arith.constant 0 : index
    %59 = vector.load %arg4[%c0_21, %c0_22] : memref<256x256xbf16, #tpu.memory_space<vmem>>, vector<256x256xbf16>
    %c0_23 = arith.constant 0 : index
    %c0_24 = arith.constant 0 : index
    %60 = vector.load %arg5[%c0_23, %c0_24] : memref<256x256xbf16, #tpu.memory_space<vmem>>, vector<256x256xbf16>
    %61 = arith.truncf %55 : vector<1x256xf32> to vector<1x256xbf16>
    %cst_25 = arith.constant dense<0.000000e+00> : vector<1x256xf32>
    %62 = tpu.matmul %61, %59, %cst_25 {dimension_numbers = #tpu.dot_dimension_numbers<[1], [0], [0], [1], [0, 0, 1, 1], [], []>} : vector<1x256xbf16>, vector<256x256xbf16>, vector<1x256xf32> -> vector<1x256xf32>
    %63 = arith.truncf %58 : vector<1x256xf32> to vector<1x256xbf16>
    %cst_26 = arith.constant dense<0.000000e+00> : vector<1x256xf32>
    %64 = tpu.matmul %63, %60, %cst_26 {dimension_numbers = #tpu.dot_dimension_numbers<[1], [0], [0], [1], [0, 0, 1, 1], [], []>} : vector<1x256xbf16>, vector<256x256xbf16>, vector<1x256xf32> -> vector<1x256xf32>
    %65 = arith.addf %62, %64 : vector<1x256xf32>
    %66 = arith.negf %65 : vector<1x256xf32>
    %67 = math.exp %66 : vector<1x256xf32>
    %cst_27 = arith.constant 1.000000e+00 : f32
    %68 = vector.broadcast %cst_27 : f32 to vector<1x256xf32>
    %69 = arith.addf %68, %67 : vector<1x256xf32>
    %70 = arith.divf %68, %69 : vector<1x256xf32>
    %71 = vector.shape_cast %70 : vector<1x256xf32> to vector<1x1x256xf32>
    %72 = vector.broadcast %71 : vector<1x1x256xf32> to vector<1x32x256xf32>
    %73 = arith.mulf %54, %72 : vector<1x32x256xf32>
    %74 = arith.addf %73, %0 : vector<1x32x256xf32>
    %c0_28 = arith.constant 0 : index
    %c0_29 = arith.constant 0 : index
    %c0_30 = arith.constant 0 : index
    %75 = vector.load %arg6[%c0_28, %c0_29, %c0_30] : memref<1x32x256xf32, #tpu.memory_space<vmem>>, vector<1x32x256xf32>
    tpu.vector_store %arg6[%c0_28, %c0_29, %c0_30], %74 {strides = array<i32>} : memref<1x32x256xf32, #tpu.memory_space<vmem>>, vector<1x32x256xf32>,
    return
  }
  func.func @transform_0(%arg0: i32) -> (i32, i32, i32) {
    %c0_i32 = arith.constant 0 : i32
    %c0_i32_0 = arith.constant 0 : i32
    %c0_i32_1 = arith.constant 0 : i32
    return %arg0, %c0_i32, %c0_i32_0 : i32, i32, i32
  }
  func.func @transform_1(%arg0: i32) -> (i32, i32) {
    %c0_i32 = arith.constant 0 : i32
    %c0_i32_0 = arith.constant 0 : i32
    %c0_i32_1 = arith.constant 0 : i32
    return %c0_i32, %c0_i32_0 : i32, i32
  }
  func.func @transform_2(%arg0: i32) -> (i32, i32) {
    %c0_i32 = arith.constant 0 : i32
    %c0_i32_0 = arith.constant 0 : i32
    %c0_i32_1 = arith.constant 0 : i32
    return %c0_i32, %c0_i32_0 : i32, i32
  }
  func.func @transform_3(%arg0: i32) -> (i32, i32) {
    %c0_i32 = arith.constant 0 : i32
    %c0_i32_0 = arith.constant 0 : i32
    %c0_i32_1 = arith.constant 0 : i32
    return %c0_i32, %c0_i32_0 : i32, i32
  }
  func.func @transform_4(%arg0: i32) -> (i32, i32) {
    %c0_i32 = arith.constant 0 : i32
    %c0_i32_0 = arith.constant 0 : i32
    %c0_i32_1 = arith.constant 0 : i32
    return %c0_i32, %c0_i32_0 : i32, i32
  }
  func.func @transform_5(%arg0: i32) -> (i32, i32, i32) {
    %c0_i32 = arith.constant 0 : i32
    %c0_i32_0 = arith.constant 0 : i32
    %c0_i32_1 = arith.constant 0 : i32
    return %arg0, %c0_i32, %c0_i32_0 : i32, i32, i32
  }
}

</mosaic_0001>

<bundles_post_ra>
// kernel: tpu_custom_call.1
= control target key start
LH: loop header
LB: loop body
LE: loop exit
PB: predicated region body
PF: predicated region fallthrough
CT: control target
= control target key end

     0   :  { %10 = vsyncpa [#allocation3], 0  ;;  %s2169_s0 = inlined_call_operand.hbm [shape: f32[2,32,256], index: 0, kind: input, shape index: {}]   ;;  %s2170_s1 = inlined_call_operand.vmem [shape: f32[32,2], index: 1, kind: input, shape index: {}]   ;;  %s2171_s2 = inlined_call_operand.vmem [shape: f32[32,2], index: 2, kind: input, shape index: {}]   ;;  %s2172_s3 = inlined_call_operand.hbm [shape: bf16[256,256], index: 3, kind: input, shape index: {}]   ;;  %s2173_s4 = inlined_call_operand.hbm [shape: bf16[256,256], index: 4, kind: input, shape index: {}]   ;;  %s2174_s5 = inlined_call_operand.hbm [shape: f32[2,32,256], index: 5, kind: output, shape index: {}]  }
   0x1   :  { %12 = vsyncpa [#allocation3 + $0x1], 0 }
   0x2   :  { %13 = vsyncpa [#allocation6], 0 }
   0x3   :  { %14 = vsyncpa [#allocation4], 0 }
   0x4   :  { %16 = vsyncpa [#allocation4 + $0x1], 0  ;;  %s1886_s18 = smov 0   ;;  %s1888_s19 = smov 0  }
   0x5   :  { %s1890_s20 = smov 0   ;;  %s1892_s21 = smov 0  }
   0x6 LB: > { %s1907_s22 = sadd.s32 4294967295, %s1844_s21   ;;  %s1228_s23 = sadd.s32 4294967294, %s1844_s21   ;;  %s1844_s21 = sphi %s1892_s21, %s2184_s21   ;;  %s1840_s20 = sphi %s1890_s20, %s2183_s20   ;;  %s1836_s19 = sphi %s1888_s19, %s2182_s19   ;;  %s1832_s18 = sphi %s1886_s18, %s2181_s18  }
   0x7   : > { %p42_p0 = scmp.ne.s32.totalorder %s1836_s19, %s1832_s18  ;;  %p43_p1 = scmp.eq.s32.totalorder %s1907_s22, 0 }
   0x8   : > { %p150_p2 = scmp.eq.s32.totalorder %s1907_s22, 1  ;;  %p156_p3 = scmp.eq.s32.totalorder %s1228_s23, 1 }
   0x9   : > { %p1916_p4 = por %p43_p1, %p42_p0  ;;  %p1229_p5 = scmp.ge.s32.totalorder %s1844_s21, 1 }
   0xa   : > { %p1921_p6 = por %p156_p3, %p42_p0  ;;  %p163_p7 = scmp.lt.s32.totalorder %s1844_s21, 3 }
   0xb   : > { %s180_s28 = sshll.u32 %s2172_s3, 4  ;;  %s1846_s30 = smov [#allocation5]   ;;  %s181_s28 = int_to_ptr.hbm [resolvable:$true] %s180_s28 }
   0xc   : > { %p1929_p8 = pnand %p1229_p5, %p163_p7  ;;  %s182_s6 = sshll.u32 %s1846_s30, 4  ;;  %s183_s6 = int_to_ptr.vmem [resolvable:$true] %s182_s6 }
   0xd   : > { %s194_s9 = sshll.u32 %s2173_s4, 4  ;;  %s1847_s10 = smov 128   ;;  %s195_s9 = int_to_ptr.hbm [resolvable:$true] %s194_s9 }
   0xe   : > { %p1586_p9 = pneg %p1929_p8  ;;  %s1848_s11 = smov 8  }
   0xf   : > { %s1849_s12 = smov [#allocation7]   ;;  %s1942_s14 = sadd.s32 1, %s1844_s21  }
  0x10   : > { %p1587_p10 = pnand %p1586_p9, %p43_p1  ;;  %s196_s13 = sshll.u32 %s1849_s12, 4  ;;  %s197_s13 = int_to_ptr.vmem [resolvable:$true] %s196_s13 }
  0x11   : > { %s29_s15 = sadd.s32 1, %s1840_s20  ;;  %s26_s16 = ssub.s32 %s1844_s21, %s1942_s14 }
  0x12   : > { %1589 = dma.hbm_to_vmem [thread:$0]  (!%p1587_p10), %s181_s28, 4096, %s183_s6, [#allocation6], %s1847_s10, %s1847_s10, %s1848_s11  }
  0x13   : > { %1592 = dma.hbm_to_vmem [thread:$0]  (!%p1587_p10), %s195_s9, 4096, %s197_s13, [#allocation6], %s1847_s10, %s1847_s10, %s1848_s11  }
  0x14   : > { %p36_p12 = scmp.ne.s32.totalorder %s1840_s20, %s1836_s19  ;;  %p27_p13 = scmp.eq.s32.totalorder %s26_s16, 0 }
  0x15   : > { %p37_p0 = scmp.eq.s32.totalorder %s1844_s21, 0  ;;  %p1603_p5 = scmp.lt.s32.totalorder %s1844_s21, 2 }
  0x16   : > { %p1952_p3 = por %p150_p2, %p36_p12  ;;  %s210_s26 = sand.u32 1, %s1840_s20  }
  0x17   : > { %s1958_s23 = scalar_select %p27_p13, %s1840_s20, %s29_s15  }
  0x18   : > { %p38_p7 = por %p37_p0, %p36_p12  ;;  %s1233_s27 = sshll.u32 %s210_s26, 6 }
  0x19   : > { %s1508_s28 = sshll.u32 %s1844_s21, 6  ;;  %s214_s8 = scalar_lea.vmem [#allocation2], %s1233_s27 }
  0x1a   : > { %s219_s7 = scalar_lea.hbm %s2169_s0, %s1508_s28  ;;  %s222_s9 = sshll.u32 %s214_s8, 4  ;;  %s223_s9 = int_to_ptr.vmem [resolvable:$true] %s222_s9 }
  0x1b   : > { %s220_s10 = sshll.u32 %s219_s7, 4  ;;  %p1965_p2 = pnand %p1603_p5, %p38_p7  ;;  %s221_s10 = int_to_ptr.hbm [resolvable:$true] %s220_s10 }
  0x1c   : > { %s211_s12 = scalar_lea.sflag [#allocation3], %s210_s26  ;;  %s1744_s13 = sshra.s32 %s221_s10, 4  ;;  %s1745_s13 = int_to_ptr.hbm [resolvable:$true] %s1744_s13 }
  0x1d   : > { %s1746_s15 = scalar_lea.hbm %s1745_s13, 64  ;;  %p1748_p10 = pneg %p1965_p2 }
  0x1e   : > { %p1747_p9 = scmp.ne.s32.totalorder %s1745_s13, %s1746_s15  ;;  %s1751_s28 = scalar_lea.hbm %s2169_s0, 128 }
  0x1f   : > { %p1752_p0 = scmp.lt.s32.totalorder %s1745_s13, %s2169_s0  ;;  %p1753_p5 = scmp.lt.s32.totalorder %s1751_s28, %s1746_s15 }
  0x20   : > { %p1749_p12 = pnand %p1748_p10, %p1747_p9 }
  0x21   : > { %p1754_p7 = por %p1753_p5, %p1752_p0 }
  0x22   : > { %p1750_p13 = pneg %p1749_p12 }
  0x24   : > { %p1755_p11 = pnand %p1754_p7, %p1750_p13 }
  0x26   : > { %1758 = shalt.err (!%p1755_p11)
}
  0x27   : > { %s1850_s26 = smov 256   ;;  %s1851_s7 = smov 16  }
  0x28   : > { %1596 = dma.hbm_to_vmem [thread:$0]  (!%p1965_p2), %s221_s10, 1024, %s223_s9, %s211_s12, %s1850_s26, %s1850_s26, %s1851_s7  }
  0x29   : > { %234 = sbr.rel (%p1929_p8) target bundleno = 685 (0x2ad), region = 40  ;;  %s1982_s8 = sand.u32 (!%p1929_p8), 1, %s1836_s19  }
  0x2a   : > { %s1237_s13 = sshll.u32 (!%p1929_p8), %s1982_s8, 6  ;;  %s237_s15 = scalar_lea.sflag (!%p1929_p8), [#allocation3], %s1982_s8 }
  0x2b   : > { %s1988_s16 = scalar_lea.vmem (!%p1929_p8), [#allocation2], %s1237_s13 }
  0x2e   : > { %1819 = dma.done.wait (%p1916_p4), %s237_s15, 1024  }
  0x2f   : > { %1821 = vsyncadd (%p1916_p4), %s237_s15, 4294966272 }
  0x30   : > { %1823 = dma.done.wait (%p43_p1), [#allocation6], 8192  }
  0x31   : > { %1825 = vsyncadd (%p43_p1), [#allocation6], 4294959104  ;;  %v1999_v0 = vld [vmem:[%s1988_s16] sm:$0xff]  ;;  %v2002_v1 = vld [vmem:[%s1988_s16 + $0x8] sm:$0xff]  ;;  %vm326_vm0 = vcmask 7168   ;;  %vm368_vm1 = vcmask 15368  }
  0x32   : > { %v2005_v2 = vld [vmem:[%s1988_s16 + $0x20] sm:$0xff]  ;;  %v298_v3 = vadd.f32 %v2002_v1, %v1999_v0  ;;  %v286_v4 = vmax.f32 %v1999_v0, %v2002_v1  ;;  %v2012_v5 = vld [vmem:[%s1988_s16 + $0x28] sm:$0xff]  ;;  %v2017_v7 = vld [vmem:[%s1988_s16 + $0x10] sm:$0xff]  ;;  %s1852_s10 = smov 127   ;;  %s1573_s11 = sshll.u32 %s1907_s22, 6 }
  0x33   : > { %v304_v6 = vadd.f32 %v2012_v5, %v2005_v2  ;;  %v2020_v8 = vld [vmem:[%s1988_s16 + $0x18] sm:$0xff]  ;;  %v292_v11 = vmax.f32 %v2005_v2, %v2012_v5  ;;  %v2029_v12 = vld [vmem:[%s1988_s16 + $0x30] sm:$0xff]  ;;  %v314_v19 = vld [vmem:[%s2170_s1] sm:$0xff]  ;;  %s277_s12 = scalar_lea.vmem [#allocation8], %s1237_s13  ;;  %s1132_s30 = scalar_lea.hbm %s2174_s5, %s1573_s11 }
  0x34   : > { %299 = vadd.xlane.f32.xlu0 %v298_v3  ;;  %287 = vmax.xlane.f32.xlu1 %v286_v4  ;;  %v301_v9 = vadd.f32 %v2020_v8, %v2017_v7  ;;  %v289_v10 = vmax.f32 %v2017_v7, %v2020_v8  ;;  %v2032_v13 = vld [vmem:[%s1988_s16 + $0x38] sm:$0xff]  ;;  %v315_v22 = vld [vmem:[%s2170_s1 + $0x8] sm:$0xff]  ;;  %v316_v24 = vld [vmem:[%s2170_s1 + $0x10] sm:$0xff]  ;;  %s1133_s22 = sshll.u32 %s277_s12, 4  ;;  %s1135_s13 = sshll.u32 %s1132_s30, 4  ;;  %s1134_s22 = int_to_ptr.vmem [resolvable:$true] %s1133_s22  ;;  %s1136_s13 = int_to_ptr.hbm [resolvable:$true] %s1135_s13 }
  0x35   : > { %305 = vadd.xlane.f32.xlu2 %v304_v6  ;;  %v307_v14 = vadd.f32 %v2032_v13, %v2029_v12  ;;  %v295_v15 = vmax.f32 %v2029_v12, %v2032_v13  ;;  %v317_v46 = vld [vmem:[%s2170_s1 + $0x18] sm:$0xff]  ;;  %s1121_s6 = scalar_lea.sflag [#allocation4], %s1982_s8  ;;  %s1788_s26 = sshra.s32 %s1136_s13, 4  ;;  %s1789_s26 = int_to_ptr.hbm [resolvable:$true] %s1788_s26 }
  0x36   : > { %s1790_s7 = scalar_lea.hbm %s1789_s26, 64  ;;  %s1794_s29 = scalar_lea.hbm %s2174_s5, 128 }
  0x37   : > { %p1791_p1 = scmp.ne.s32.totalorder %s1789_s26, %s1790_s7  ;;  %p1795_p11 = scmp.lt.s32.totalorder %s1789_s26, %s2174_s5 }
  0x38   : > { %p1796_p2 = scmp.lt.s32.totalorder %s1794_s29, %s1790_s7 }
  0x39   : > { %p1792_p4 = pnand %p1791_p1, %p1952_p3 }
  0x3a   : > { %p1797_p9 = por %p1796_p2, %p1795_p11 }
  0x3b   : > { %p1793_p8 = pneg %p1792_p4 }
  0x3c   : > { %302 = vadd.xlane.f32.xlu0 %v301_v9  ;;  %290 = vmax.xlane.f32.xlu1 %v289_v10 }
  0x3d   : > { %293 = vmax.xlane.f32.xlu2 %v292_v11  ;;  %p1798_p10 = pnand %p1797_p9, %p1793_p8 }
  0x44   : > { %308 = vadd.xlane.f32.xlu0 %v307_v14  ;;  %296 = vmax.xlane.f32.xlu1 %v295_v15 }
  0xa7   : > { %v300_v16 = vpop.xlane.xlu0 %299  ;;  %v288_v17 = vpop.xlane.xlu1 %287 }
  0xa8   : > { %v306_v18 = vpop.xlane.xlu2 %305  ;;  %v310_v20 = vmul.f32 0.00390625, %v300_v16  ;;  %v322_v21 = vmul.f32 %v314_v19, %v288_v17 }
  0xa9   : > { %v312_v23 = vmul.f32 0.00390625, %v306_v18 }
  0xaa   : > { %v341_v27 = vmul.f32 %v314_v19, %v310_v20  ;;  %v327_v31 = vsel %vm326_vm0, %v322_v21, 0.0  ;;  %v369_v40 = vsel %vm368_vm1, %v322_v21, 0.0 }
  0xab   : > { %v343_v36 = vmul.f32 %v316_v24, %v312_v23 }
  0xac   : > { %v345_v39 = vsel %vm326_vm0, %v341_v27, 0.0  ;;  %v383_v47 = vsel %vm368_vm1, %v341_v27, 0.0 }
  0xad   : > { %v348_v48 = vsel %vm326_vm0, %v343_v36, 0.0  ;;  %v386_v57 = vsel %vm368_vm1, %v343_v36, 0.0 }
  0xaf   : > { %v303_v25 = vpop.xlane.xlu0 %302  ;;  %v291_v26 = vpop.xlane.xlu1 %290 }
  0xb0   : > { %v311_v28 = vmul.f32 0.00390625, %v303_v25  ;;  %v323_v29 = vmul.f32 %v315_v22, %v291_v26  ;;  %v294_v30 = vpop.xlane.xlu2 %293 }
  0xb1   : > { %v324_v32 = vmul.f32 %v316_v24, %v294_v30 }
  0xb2   : > { %v342_v33 = vmul.f32 %v315_v22, %v311_v28  ;;  %v328_v34 = vsel %vm326_vm0, %v323_v29, 0.0  ;;  %v370_v35 = vsel %vm368_vm1, %v323_v29, 0.0 }
  0xb3   : > { %v329_v37 = vadd.f32 %v328_v34, %v327_v31  ;;  %v330_v38 = vsel %vm326_vm0, %v324_v32, 0.0  ;;  %v371_v44 = vadd.f32 %v370_v35, %v369_v40  ;;  %v372_v49 = vsel %vm368_vm1, %v324_v32, 0.0  ;;  %v320_v40 = vld [vmem:[%s2171_s2 + $0x10] sm:$0xff] }
  0xb4   : > { %v346_v41 = vsel %vm326_vm0, %v342_v33, 0.0  ;;  %v384_v42 = vsel %vm368_vm1, %v342_v33, 0.0 }
  0xb5   : > { %v347_v43 = vadd.f32 %v346_v41, %v345_v39  ;;  %v331_v45 = vadd.f32 %v330_v38, %v329_v37  ;;  %v385_v50 = vadd.f32 %v384_v42, %v383_v47  ;;  %v373_v56 = vadd.f32 %v372_v49, %v371_v44  ;;  %v319_v41 = vld [vmem:[%s2171_s2 + $0x8] sm:$0xff]  ;;  %v318_v42 = vld [vmem:[%s2171_s2] sm:$0xff]  ;;  %v321_v44 = vld [vmem:[%s2171_s2 + $0x18] sm:$0xff] }
  0xb7   : > { %v349_v51 = vadd.f32 %v348_v48, %v347_v43  ;;  %v309_v52 = vpop.xlane.xlu0 %308  ;;  %v297_v53 = vpop.xlane.xlu1 %296  ;;  %v387_v61 = vadd.f32 %v386_v57, %v385_v50 }
  0xb8   : > { %v313_v54 = vmul.f32 0.00390625, %v309_v52  ;;  %v325_v55 = vmul.f32 %v317_v46, %v297_v53 }
  0xba   : > { %v344_v58 = vmul.f32 %v317_v46, %v313_v54  ;;  %v332_v59 = vsel %vm326_vm0, %v325_v55, 0.0  ;;  %v374_v60 = vsel %vm368_vm1, %v325_v55, 0.0  ;;  %v1853_v54 = vmov 0  }
  0xbb   : > { %v333_v62 = vadd.f32 %v332_v59, %v331_v45  ;;  %v375_v63 = vadd.f32 %v374_v60, %v373_v56  ;;  %1649 = vset.pattern.permute.xlu0 %v1853_v54  ;;  %1651 = vset.pattern.permute.xlu1 %v1853_v54 }
  0xbc   : > { %v350_v3 = vsel %vm326_vm0, %v344_v58, 0.0  ;;  %v388_v4 = vsel %vm368_vm1, %v344_v58, 0.0  ;;  %1650 = vset.pattern.permute.xlu2 %v1853_v54 }
  0xbd   : > { %v351_v6 = vadd.f32 %v350_v3, %v349_v51  ;;  %v389_v9 = vadd.f32 %v388_v4, %v387_v61  ;;  %v334_v10 = vrot.slane %v333_v62, 4  ;;  %v376_v11 = vrot.slane %v375_v63, 4 }
  0xbf   : > { %v352_v14 = vrot.slane %v351_v6, 4  ;;  %v390_v15 = vrot.slane %v389_v9, 4  ;;  %v335_v16 = vadd.f32 %v334_v10, %v333_v62  ;;  %v377_v17 = vadd.f32 %v376_v11, %v375_v63 }
  0xc1   : > { %v353_v18 = vadd.f32 %v352_v14, %v351_v6  ;;  %v391_v19 = vadd.f32 %v390_v15, %v389_v9  ;;  %v336_v20 = vrot.slane %v335_v16, 2  ;;  %v378_v21 = vrot.slane %v377_v17, 2 }
  0xc3   : > { %v354_v22 = vrot.slane %v353_v18, 2  ;;  %v392_v23 = vrot.slane %v391_v19, 2  ;;  %v337_v24 = vadd.f32 %v336_v20, %v335_v16  ;;  %v379_v25 = vadd.f32 %v378_v21, %v377_v17 }
  0xc5   : > { %v355_v26 = vadd.f32 %v354_v22, %v353_v18  ;;  %v393_v27 = vadd.f32 %v392_v23, %v391_v19  ;;  %v338_v28 = vrot.slane %v337_v24, 1  ;;  %v380_v29 = vrot.slane %v379_v25, 1 }
  0xc7   : > { %v356_v30 = vrot.slane %v355_v26, 1  ;;  %v394_v31 = vrot.slane %v393_v27, 1  ;;  %v339_v32 = vadd.f32 %v338_v28, %v337_v24  ;;  %v381_v33 = vadd.f32 %v380_v29, %v379_v25 }
  0xc9   : > { %v357_v34 = vadd.f32 %v356_v30, %v355_v26  ;;  %v395_v35 = vadd.f32 %v394_v31, %v393_v27  ;;  %v340_v38 = vmax.f32 %v339_v32, 0.0  ;;  %v382_v39 = vmax.f32 %v381_v33, 0.0 }
  0xcb   : > { %v358_v36 = vmax.f32 %v357_v34, 0.0  ;;  %v396_v37 = vmax.f32 %v395_v35, 0.0 }
  0xcd   : > { %v397_v43 = vadd.f32 %v396_v37, %v382_v39  ;;  %v359_v45 = vadd.f32 %v358_v36, %v340_v38 }
  0xcf   : > { %v400_v46 = vmul.f32 %v397_v43, %v320_v40  ;;  %v399_v47 = vmul.f32 %v397_v43, %v319_v41  ;;  %v398_v48 = vmul.f32 %v397_v43, %v318_v42  ;;  %v360_v49 = vmul.f32 %v359_v45, %v318_v42 }
  0xd0   : > { %v363_v50 = vmul.f32 %v359_v45, %v321_v44  ;;  %v362_v51 = vmul.f32 %v359_v45, %v320_v40  ;;  %v361_v52 = vmul.f32 %v359_v45, %v319_v41  ;;  %v401_v53 = vmul.f32 %v397_v43, %v321_v44 }
  0xd1   : > { %410 = vrot.lane.b32.xlu1 %v400_v46, %s1852_s10  ;;  %408 = vrot.lane.b32.xlu0 %v399_v47, %s1852_s10 }
  0xd2   : > { %406 = vrot.lane.b32.xlu2 %v398_v48, %s1852_s10 }
  0xda   : > { %412 = vrot.lane.b32.xlu2 %v401_v53, %s1852_s10 }
 0x12c   : > { %v407_v55 = vpop.permute.xlu2 %406 }
 0x12d   : > { %v418_v56 = vadd.f32 %v407_v55, %v360_v49 }
 0x12f   : > { %v1241_v57 = vmul.f32 -1.442695, %v418_v56 }
 0x131   : > { %1652 = vpow2.f32 %v1241_v57 }
 0x134   : > { %v413_v58 = vpop.permute.xlu2 %412 }
 0x135   : > { %v421_v61 = vadd.f32 %v413_v58, %v363_v50 }
 0x137   : > { %v1653_v59 = vpop.eup %1652  ;;  %v1244_v62 = vmul.f32 -1.442695, %v421_v61  ;;  %v1367_v61 = vld [vmem:[#allocation7 + $0xf0] sm:$0xf] }
 0x138   : > { %v434_v60 = vadd.f32 1.0, %v1653_v59  ;;  %v1303_v59 = vld [vmem:[#allocation7 + $0x70] sm:$0xf] }
 0x13a   : > { %1654 = vrcp.f32 %v434_v60  ;;  %v449_v14 = vand.u32 2147483648, %v434_v60  ;;  %v447_v16 = vand.u32 2147483647, %v434_v60  ;;  %vm443_vm3 = vweird.f32 %v434_v60 }
 0x13b   : > { %1656 = vpow2.f32 %v1244_v62 }
 0x13c   : > { %v450_v21 = vor.u32 1.1754944e-38, %v449_v14  ;;  %vm448_vm5 = vcmp.eq.f32.partialorder %v447_v16, 8.507059e+37  ;;  %v1295_v14 = vld [vmem:[#allocation7 + $0x60] sm:$0xf]  ;;  %v1554_v16 = vld [vmem:[#allocation7 + $0x64] sm:$0xf0] }
 0x140   : > { %v1655_v63 = vpop.eup %1654 }
 0x141   : > { %v439_v3 = vmul.f32 %v1655_v63, %v434_v60  ;;  %vm444_vm2 = vweird.f32 %v1655_v63  ;;  %v1657_v19 = vpop.eup %1656  ;;  %v1556_v60 = vld [vmem:[#allocation7 + $0x74] sm:$0xf0] }
 0x142   : > { %vm445_vm4 = vmor %vm443_vm3, %vm444_vm2  ;;  %v437_v23 = vadd.f32 1.0, %v1657_v19  ;;  %v1304_v62 = vor.u32 %v1556_v60, %v1303_v59  ;;  %v1296_v19 = vor.u32 %v1554_v16, %v1295_v14  ;;  %v1337_v59 = vld [vmem:[#allocation7 + $0xb8] sm:$0xf0]  ;;  %v1329_v14 = vld [vmem:[#allocation7 + $0xa8] sm:$0xf0] }
 0x143   : > { %v411_v4 = vpop.permute.xlu1 %410  ;;  %v409_v6 = vpop.permute.xlu0 %408  ;;  %v440_v9 = vsub.f32 1.0, %v439_v3  ;;  %v1555_v3 = vld [vmem:[#allocation7 + $0x74] sm:$0xf] }
 0x144   : > { %v420_v10 = vadd.f32 %v411_v4, %v362_v51  ;;  %v419_v11 = vadd.f32 %v409_v6, %v361_v52  ;;  %v494_v54 = vand.u32 2147483648, %v437_v23  ;;  %vm488_vm15 = vweird.f32 %v437_v23  ;;  %v1305_v4 = vld [vmem:[#allocation7 + $0x78] sm:$0xf0]  ;;  %792 = vmatpush.bf16.msra.mxu0 %v1304_v62  ;;  %v1263_v62 = vld [vmem:[#allocation7 + $0x20] sm:$0xf] }
 0x145   : > { %v441_v15 = vmul.f32 %v1655_v63, %v440_v9  ;;  %v492_v55 = vand.u32 2147483647, %v437_v23  ;;  %v1308_v9 = vor.u32 %v1555_v3, %v1305_v4  ;;  %v1327_v3 = vld [vmem:[#allocation7 + $0xa0] sm:$0xf] }
 0x146   : > { %v1243_v17 = vmul.f32 -1.442695, %v420_v10  ;;  %v1242_v18 = vmul.f32 -1.442695, %v419_v11  ;;  %v495_v57 = vor.u32 1.1754944e-38, %v494_v54 }
 0x147   : > { %v442_v20 = vadd.f32 %v1655_v63, %v441_v15  ;;  %vm493_vm1 = vcmp.eq.f32.partialorder %v492_v55, 8.507059e+37  ;;  %v1571_v10 = vld [vmem:[#allocation7 + $0xf4] sm:$0xf]  ;;  %v1369_v11 = vld [vmem:[#allocation7 + $0xf8] sm:$0xf0]  ;;  %818 = vmatpush.bf16.msra.mxu2 %v1308_v9 }
 0x148   : > { %1658 = vpow2.f32 %v1243_v17  ;;  %v1372_v15 = vor.u32 %v1571_v10, %v1369_v11  ;;  %v1359_v17 = vld [vmem:[#allocation7 + $0xe0] sm:$0xf]  ;;  %793 = vmatpush.bf16.msra.mxu0 %v1296_v19  ;;  %v1564_v54 = vld [vmem:[#allocation7 + $0xb4] sm:$0xf0]  ;;  %v1547_v55 = vld [vmem:[#allocation7 + $0x34] sm:$0xf] }
 0x149   : > { %1660 = vpow2.f32 %v1242_v18  ;;  %v446_v22 = vsel %vm445_vm4, %v1655_v63, %v442_v20  ;;  %v1572_v63 = vld [vmem:[#allocation7 + $0xf4] sm:$0xf0]  ;;  %v1570_v18 = vld [vmem:[#allocation7 + $0xe4] sm:$0xf0]  ;;  %v1545_v9 = vld [vmem:[#allocation7 + $0x24] sm:$0xf] }
 0x14a   : > { %v451_v24 = vsel %vm448_vm5, %v450_v21, %v446_v22  ;;  %1662 = vrcp.f32 %v437_v23  ;;  %v1368_v6 = vor.u32 %v1572_v63, %v1367_v61  ;;  %v1360_v20 = vor.u32 %v1570_v18, %v1359_v17  ;;  %v1553_v21 = vld [vmem:[#allocation7 + $0x64] sm:$0xf]  ;;  %v1297_v22 = vld [vmem:[#allocation7 + $0x68] sm:$0xf0]  ;;  %831 = vmatpush.bf16.msra.mxu3 %v1372_v15  ;;  %v1546_v63 = vld [vmem:[#allocation7 + $0x24] sm:$0xf0] }
 0x14b   : > { %500 = vperm.xlu0 %1649, %v451_v24   ;;  %v1300_v24 = vor.u32 %v1553_v21, %v1297_v22  ;;  %v1265_v10 = vld [vmem:[#allocation7 + $0x28] sm:$0xf0]  ;;  %v1561_v11 = vld [vmem:[#allocation7 + $0xa4] sm:$0xf]  ;;  %v1264_v15 = vor.u32 %v1546_v63, %v1263_v62  ;;  %v1255_v19 = vld [vmem:[#allocation7 + $0x10] sm:$0xf] }
 0x14c   : > { %805 = vmatpush.bf16.msra.mxu1 %v1368_v6  ;;  %v1562_v6 = vld [vmem:[#allocation7 + $0xa4] sm:$0xf0]  ;;  %v1268_v17 = vor.u32 %v1545_v9, %v1265_v10  ;;  %v1332_v18 = vor.u32 %v1561_v11, %v1329_v14  ;;  %v1319_v21 = vld [vmem:[#allocation7 + $0x90] sm:$0xf]  ;;  %v1425_v62 = vld [vmem:[#allocation5 + $0x68] sm:$0xf0] }
 0x14d   : > { %819 = vmatpush.bf16.msra.mxu2 %v1300_v24  ;;  %v1328_v16 = vor.u32 %v1562_v6, %v1327_v3  ;;  %v1543_v24 = vld [vmem:[#allocation7 + $0x14] sm:$0xf]  ;;  %v1537_v63 = vld [vmem:[#allocation5 + $0xe4] sm:$0xf]  ;;  %v1489_v3 = vld [vmem:[#allocation5 + $0xe8] sm:$0xf0] }
 0x14e   : > { %v1659_v25 = vpop.eup %1658  ;;  %v1492_v6 = vor.u32 %v1537_v63, %v1489_v3  ;;  %v1415_v9 = vld [vmem:[#allocation5 + $0x50] sm:$0xf]  ;;  %v1520_v10 = vld [vmem:[#allocation5 + $0x54] sm:$0xf0] }
 0x14f   : > { %v1661_v26 = vpop.eup %1660  ;;  %v436_v27 = vadd.f32 1.0, %v1659_v25  ;;  %v1361_v25 = vld [vmem:[#allocation7 + $0xe8] sm:$0xf0]  ;;  %v1479_v11 = vld [vmem:[#allocation5 + $0xd0] sm:$0xf] }
 0x150   : > { %v435_v28 = vadd.f32 1.0, %v1661_v26  ;;  %v1663_v29 = vpop.eup %1662  ;;  %806 = vmatpush.bf16.msra.mxu1 %v1360_v20  ;;  %v1544_v20 = vld [vmem:[#allocation7 + $0x14] sm:$0xf0]  ;;  %v1383_v63 = vld [vmem:[#allocation5 + $0x10] sm:$0xf] }
 0x151   : > { %1664 = vrcp.f32 %v436_v27  ;;  %v484_v31 = vmul.f32 %v1663_v29, %v437_v23  ;;  %v479_v36 = vand.u32 2147483648, %v436_v27  ;;  %v477_v40 = vand.u32 2147483647, %v436_v27  ;;  %v1569_v23 = vld [vmem:[#allocation7 + $0xe4] sm:$0xf] }
 0x152   : > { %1666 = vrcp.f32 %v435_v28  ;;  %v464_v41 = vand.u32 2147483648, %v435_v28  ;;  %v462_v43 = vand.u32 2147483647, %v435_v28  ;;  %vm473_vm8 = vweird.f32 %v436_v27  ;;  %v1536_v14 = vld [vmem:[#allocation5 + $0xd4] sm:$0xf0] }
 0x153   : > { %v485_v38 = vsub.f32 1.0, %v484_v31  ;;  %v480_v45 = vor.u32 1.1754944e-38, %v479_v36  ;;  %vm458_vm10 = vweird.f32 %v435_v28  ;;  %vm478_vm11 = vcmp.eq.f32.partialorder %v477_v40, 8.507059e+37  ;;  %v1568_v31 = vld [vmem:[#allocation7 + $0xd4] sm:$0xf0] }
 0x154   : > { %v465_v49 = vor.u32 1.1754944e-38, %v464_v41  ;;  %vm463_vm13 = vcmp.eq.f32.partialorder %v462_v43, 8.507059e+37  ;;  %vm489_vm14 = vweird.f32 %v1663_v29  ;;  %v1364_v26 = vor.u32 %v1569_v23, %v1361_v25  ;;  %v1567_v36 = vld [vmem:[#allocation7 + $0xd4] sm:$0xf]  ;;  %v1550_v40 = vld [vmem:[#allocation7 + $0x44] sm:$0xf0] }
 0x155   : > { %v486_v47 = vmul.f32 %v1663_v29, %v485_v38  ;;  %vm490_vm0 = vmor %vm488_vm15, %vm489_vm14  ;;  %v1279_v38 = vld [vmem:[#allocation7 + $0x40] sm:$0xf]  ;;  %v1256_v22 = vor.u32 %v1544_v20, %v1255_v19  ;;  %v1560_v23 = vld [vmem:[#allocation7 + $0x94] sm:$0xf0]  ;;  %v1480_v20 = vor.u32 %v1536_v14, %v1479_v11 }
 0x156   : > { %832 = vmatpush.bf16.msra.mxu3 %v1364_v26  ;;  %v1343_v41 = vld [vmem:[#allocation7 + $0xc0] sm:$0xf]  ;;  %v1280_v43 = vor.u32 %v1550_v40, %v1279_v38  ;;  %v1257_v25 = vld [vmem:[#allocation7 + $0x18] sm:$0xf0]  ;;  %v1320_v26 = vor.u32 %v1560_v23, %v1319_v21  ;;  %v1557_v40 = vld [vmem:[#allocation7 + $0x84] sm:$0xf] }
 0x157   : > { %v1665_v30 = vpop.eup %1664  ;;  %v487_v53 = vadd.f32 %v1663_v29, %v486_v47  ;;  %v1565_v47 = vld [vmem:[#allocation7 + $0xc4] sm:$0xf]  ;;  %v1481_v19 = vld [vmem:[#allocation5 + $0xd8] sm:$0xf0]  ;;  %v1518_v23 = vld [vmem:[#allocation5 + $0x44] sm:$0xf0] }
 0x158   : > { %v1667_v32 = vpop.eup %1666  ;;  %v469_v33 = vmul.f32 %v1665_v30, %v436_v27  ;;  %vm474_vm6 = vweird.f32 %v1665_v30  ;;  %v1287_v27 = vld [vmem:[#allocation7 + $0x50] sm:$0xf]  ;;  %v1512_v3 = vld [vmem:[#allocation5 + $0x14] sm:$0xf0]  ;;  %v1527_v14 = vld [vmem:[#allocation5 + $0x94] sm:$0xf] }
 0x159   : > { %v454_v34 = vmul.f32 %v1667_v32, %v435_v28  ;;  %vm459_vm7 = vweird.f32 %v1667_v32  ;;  %vm475_vm9 = vmor %vm473_vm8, %vm474_vm6  ;;  %v491_v56 = vsel %vm490_vm0, %v1663_v29, %v487_v53  ;;  %v1552_v28 = vld [vmem:[#allocation7 + $0x54] sm:$0xf0]  ;;  %v1351_v29 = vld [vmem:[#allocation7 + $0xd0] sm:$0xf] }
 0x15a   : > { %v470_v35 = vsub.f32 1.0, %v469_v33  ;;  %vm460_vm12 = vmor %vm458_vm10, %vm459_vm7  ;;  %v496_v58 = vsel %vm493_vm1, %v495_v57, %v491_v56  ;;  %v1289_v33 = vld [vmem:[#allocation7 + $0x58] sm:$0xf0]  ;;  %v1335_v53 = vld [vmem:[#allocation7 + $0xb0] sm:$0xf] }
 0x15b   : > { %v455_v37 = vsub.f32 1.0, %v454_v34  ;;  %v1352_v34 = vor.u32 %v1568_v31, %v1351_v29  ;;  %v1273_v57 = vld [vmem:[#allocation7 + $0x38] sm:$0xf0]  ;;  %v1336_v60 = vor.u32 %v1564_v54, %v1335_v53  ;;  %v1247_v31 = vld [vmem:[#allocation7] sm:$0xf] }
 0x15c   : > { %v471_v39 = vmul.f32 %v1665_v30, %v470_v35  ;;  %v1276_v61 = vor.u32 %v1547_v55, %v1273_v57  ;;  %v1321_v29 = vld [vmem:[#allocation7 + $0x98] sm:$0xf0]  ;;  %v1423_v54 = vld [vmem:[#allocation5 + $0x60] sm:$0xf]  ;;  %v1522_v55 = vld [vmem:[#allocation5 + $0x64] sm:$0xf0] }
 0x15d   : > { %v456_v42 = vmul.f32 %v1667_v32, %v455_v37  ;;  %v1353_v37 = vld [vmem:[#allocation7 + $0xd8] sm:$0xf0]  ;;  %807 = vmatpush.bf16.msra.mxu1 %v1352_v34  ;;  %v1424_v57 = vor.u32 %v1522_v55, %v1423_v54  ;;  %v1513_v55 = vld [vmem:[#allocation5 + $0x24] sm:$0xf] }
 0x15e   : > { %v472_v44 = vadd.f32 %v1665_v30, %v471_v39  ;;  %v1356_v39 = vor.u32 %v1567_v36, %v1353_v37  ;;  %v1541_v36 = vld [vmem:[#allocation7 + $0x4] sm:$0xf]  ;;  %v1249_v37 = vld [vmem:[#allocation7 + $0x8] sm:$0xf0]  ;;  %v1497_v53 = vld [vmem:[#allocation5 + $0xf8] sm:$0xf0] }
 0x15f   : > { %v457_v46 = vadd.f32 %v1667_v32, %v456_v42  ;;  %v1566_v42 = vld [vmem:[#allocation7 + $0xc4] sm:$0xf0] }
 0x160   : > { %v476_v48 = vsel %vm475_vm9, %v1665_v30, %v472_v44  ;;  %v1288_v30 = vor.u32 %v1552_v28, %v1287_v27  ;;  %v1344_v44 = vor.u32 %v1566_v42, %v1343_v41  ;;  %833 = vmatpush.bf16.msra.mxu3 %v1356_v39  ;;  %v1260_v27 = vor.u32 %v1543_v24, %v1257_v25  ;;  %v1559_v28 = vld [vmem:[#allocation7 + $0x94] sm:$0xf]  ;;  %v1313_v41 = vld [vmem:[#allocation7 + $0x88] sm:$0xf0]  ;;  %v1431_v42 = vld [vmem:[#allocation5 + $0x70] sm:$0xf] }
 0x161   : > { %v481_v50 = vsel %vm478_vm11, %v480_v45, %v476_v48  ;;  %v461_v51 = vsel %vm460_vm12, %v1667_v32, %v457_v46  ;;  %v1551_v32 = vld [vmem:[#allocation7 + $0x54] sm:$0xf]  ;;  %v1549_v45 = vld [vmem:[#allocation7 + $0x44] sm:$0xf]  ;;  %v1281_v46 = vld [vmem:[#allocation7 + $0x48] sm:$0xf0]  ;;  %v1252_v39 = vor.u32 %v1541_v36, %v1249_v37 }
 0x162   : > { %510 = vperm.xlu1 %1651, %v481_v50   ;;  %v466_v52 = vsel %vm463_vm13, %v465_v49, %v461_v51  ;;  %v1292_v35 = vor.u32 %v1551_v32, %v1289_v33  ;;  %794 = vmatpush.bf16.msra.mxu0 %v1288_v30  ;;  %v1284_v48 = vor.u32 %v1549_v45, %v1281_v46  ;;  %v1345_v49 = vld [vmem:[#allocation7 + $0xc8] sm:$0xf0]  ;;  %v1271_v50 = vld [vmem:[#allocation7 + $0x30] sm:$0xf]  ;;  %v1548_v51 = vld [vmem:[#allocation7 + $0x34] sm:$0xf0] }
 0x163   : > { %505 = vperm.xlu2 %1650, %v466_v52   ;;  %v1348_v52 = vor.u32 %v1565_v47, %v1345_v49  ;;  %v1272_v56 = vor.u32 %v1548_v51, %v1271_v50  ;;  %808 = vmatpush.bf16.msra.mxu1 %v1344_v44  ;;  %v1324_v30 = vor.u32 %v1559_v28, %v1321_v29  ;;  %v1542_v32 = vld [vmem:[#allocation7 + $0x4] sm:$0xf0]  ;;  %v1311_v33 = vld [vmem:[#allocation7 + $0x80] sm:$0xf]  ;;  %v1495_v44 = vld [vmem:[#allocation5 + $0xf0] sm:$0xf] }
 0x164   : > { %820 = vmatpush.bf16.msra.mxu2 %v1292_v35  ;;  %v1248_v34 = vor.u32 %v1542_v32, %v1247_v31  ;;  %v1558_v35 = vld [vmem:[#allocation7 + $0x84] sm:$0xf0]  ;;  %v1540_v45 = vld [vmem:[#allocation5 + $0xf4] sm:$0xf0]  ;;  %v1316_v46 = vor.u32 %v1557_v40, %v1313_v41  ;;  %v1523_v49 = vld [vmem:[#allocation5 + $0x74] sm:$0xf] }
 0x165   : > { %834 = vmatpush.bf16.msra.mxu3 %v1348_v52  ;;  %v1312_v38 = vor.u32 %v1558_v35, %v1311_v33  ;;  %v1433_v50 = vld [vmem:[#allocation5 + $0x78] sm:$0xf0]  ;;  %v1539_v51 = vld [vmem:[#allocation5 + $0xf4] sm:$0xf]  ;;  %v1471_v24 = vld [vmem:[#allocation5 + $0xc0] sm:$0xf] }
 0x166   : > { %795 = vmatpush.bf16.msra.mxu0 %v1280_v43  ;;  %v1524_v43 = vld [vmem:[#allocation5 + $0x74] sm:$0xf0]  ;;  %v1436_v52 = vor.u32 %v1523_v49, %v1433_v50  ;;  %v1409_v28 = vld [vmem:[#allocation5 + $0x48] sm:$0xf0]  ;;  %v1533_v29 = vld [vmem:[#allocation5 + $0xc4] sm:$0xf] }
 0x167   : > { %809 = vmatpush.bf16.msra.mxu1 %v1336_v60  ;;  %v1432_v47 = vor.u32 %v1524_v43, %v1431_v42  ;;  %v1521_v60 = vld [vmem:[#allocation5 + $0x64] sm:$0xf]  ;;  %v1399_v36 = vld [vmem:[#allocation5 + $0x30] sm:$0xf]  ;;  %v1516_v37 = vld [vmem:[#allocation5 + $0x34] sm:$0xf0] }
 0x168   : > { %821 = vmatpush.bf16.msra.mxu2 %v1284_v48  ;;  %v1496_v48 = vor.u32 %v1540_v45, %v1495_v44  ;;  %v1400_v40 = vor.u32 %v1516_v37, %v1399_v36  ;;  %v1532_v41 = vld [vmem:[#allocation5 + $0xb4] sm:$0xf0]  ;;  %v1515_v42 = vld [vmem:[#allocation5 + $0x34] sm:$0xf]  ;;  %v1401_v43 = vld [vmem:[#allocation5 + $0x38] sm:$0xf0] }
 0x169   : > { %v1404_v45 = vor.u32 %v1515_v42, %v1401_v43  ;;  %v1514_v50 = vld [vmem:[#allocation5 + $0x24] sm:$0xf0] }
 0x16a   : > { %796 = vmatpush.bf16.msra.mxu0 %v1272_v56  ;;  %v1500_v56 = vor.u32 %v1539_v51, %v1497_v53  ;;  %v1455_v51 = vld [vmem:[#allocation5 + $0xa0] sm:$0xf] }
 0x16b   : > { %515 = vperm.xlu2 %1650, %v496_v58   ;;  %v1563_v58 = vld [vmem:[#allocation7 + $0xb4] sm:$0xf]  ;;  %810 = vmatpush.bf16.msra.mxu1 %v1328_v16  ;;  %v1417_v16 = vld [vmem:[#allocation5 + $0x58] sm:$0xf0] }
 0x16c   : > { %v1340_v4 = vor.u32 %v1563_v58, %v1337_v59  ;;  %822 = vmatpush.bf16.msra.mxu2 %v1276_v61  ;;  %v1487_v58 = vld [vmem:[#allocation5 + $0xe0] sm:$0xf]  ;;  %v1538_v59 = vld [vmem:[#allocation5 + $0xe4] sm:$0xf0] }
 0x16d   : > { %v1488_v61 = vor.u32 %v1538_v59, %v1487_v58 }
 0x16e   : > { %835 = vmatpush.bf16.msra.mxu3 %v1340_v4  ;;  %797 = vmatpush.bf16.msra.mxu0 %v1264_v15  ;;  %v1428_v4 = vor.u32 %v1521_v60, %v1425_v62  ;;  %v1519_v15 = vld [vmem:[#allocation5 + $0x54] sm:$0xf] }
 0x16f   : > { %811 = vmatpush.bf16.msra.mxu1 %v1320_v26  ;;  %v1420_v21 = vor.u32 %v1519_v15, %v1417_v16  ;;  %v1534_v26 = vld [vmem:[#allocation5 + $0xc4] sm:$0xf0]  ;;  %v1449_v15 = vld [vmem:[#allocation5 + $0x98] sm:$0xf0] }
 0x170   : > { %823 = vmatpush.bf16.msra.mxu2 %v1268_v17  ;;  %v1416_v17 = vor.u32 %v1520_v10, %v1415_v9  ;;  %v1472_v33 = vor.u32 %v1534_v26, %v1471_v24  ;;  %v1528_v9 = vld [vmem:[#allocation5 + $0x94] sm:$0xf0]  ;;  %v1511_v10 = vld [vmem:[#allocation5 + $0x14] sm:$0xf] }
 0x172   : > { %836 = vmatpush.bf16.msra.mxu3 %v1332_v18  ;;  %798 = vmatpush.bf16.msra.mxu0 %v1256_v22  ;;  %v1535_v18 = vld [vmem:[#allocation5 + $0xd4] sm:$0xf]  ;;  %v1407_v22 = vld [vmem:[#allocation5 + $0x40] sm:$0xf] }
 0x173   : > { %812 = vmatpush.bf16.msra.mxu1 %v1312_v38  ;;  %v1484_v25 = vor.u32 %v1535_v18, %v1481_v19  ;;  %v1408_v32 = vor.u32 %v1518_v23, %v1407_v22  ;;  %v1463_v38 = vld [vmem:[#allocation5 + $0xb0] sm:$0xf]  ;;  %v1384_v19 = vor.u32 %v1512_v3, %v1383_v63 }
 0x174   : > { %824 = vmatpush.bf16.msra.mxu2 %v1260_v27  ;;  %v1517_v27 = vld [vmem:[#allocation5 + $0x44] sm:$0xf]  ;;  %v1464_v44 = vor.u32 %v1532_v41, %v1463_v38 }
 0x176   : > { %837 = vmatpush.bf16.msra.mxu3 %v1324_v30  ;;  %799 = vmatpush.bf16.msra.mxu0 %v1248_v34  ;;  %v1473_v30 = vld [vmem:[#allocation5 + $0xc8] sm:$0xf0]  ;;  %v1412_v34 = vor.u32 %v1517_v27, %v1409_v28  ;;  %v1452_v27 = vor.u32 %v1527_v14, %v1449_v15  ;;  %v1526_v28 = vld [vmem:[#allocation5 + $0x84] sm:$0xf0] }
 0x177   : > { %1017 = vmatpush.bf16.msrb.mxu1 %v1496_v48  ;;  %v1476_v35 = vor.u32 %v1533_v29, %v1473_v30  ;;  %v1391_v48 = vld [vmem:[#allocation5 + $0x20] sm:$0xf]  ;;  %v1509_v29 = vld [vmem:[#allocation5 + $0x4] sm:$0xf]  ;;  %v1377_v30 = vld [vmem:[#allocation5 + $0x8] sm:$0xf0] }
 0x178   : > { %825 = vmatpush.bf16.msra.mxu2 %v1252_v39  ;;  %v1392_v60 = vor.u32 %v1514_v50, %v1391_v48  ;;  %v1380_v38 = vor.u32 %v1509_v29, %v1377_v30 }
 0x17a   : > { %838 = vmatpush.bf16.msra.mxu3 %v1316_v46  ;;  %1004 = vmatpush.bf16.msrb.mxu0 %v1432_v47  ;;  %v1531_v46 = vld [vmem:[#allocation5 + $0xb4] sm:$0xf]  ;;  %v1465_v47 = vld [vmem:[#allocation5 + $0xb8] sm:$0xf0] }
 0x17b   : > { %1018 = vmatpush.bf16.msrb.mxu1 %v1488_v61  ;;  %v1468_v49 = vor.u32 %v1531_v46, %v1465_v47  ;;  %v1457_v61 = vld [vmem:[#allocation5 + $0xa8] sm:$0xf0] }
 0x17c   : > { %1030 = vmatpush.bf16.msrb.mxu2 %v1436_v52  ;;  %v1530_v52 = vld [vmem:[#allocation5 + $0xa4] sm:$0xf0] }
 0x17d   : > { %v1456_v62 = vor.u32 %v1530_v52, %v1455_v51 }
 0x17e   : > { %1043 = vmatpush.bf16.msrb.mxu3 %v1500_v56  ;;  %1005 = vmatpush.bf16.msrb.mxu0 %v1424_v57  ;;  %v1393_v56 = vld [vmem:[#allocation5 + $0x28] sm:$0xf0]  ;;  %v1529_v57 = vld [vmem:[#allocation5 + $0xa4] sm:$0xf] }
 0x17f   : > { %1019 = vmatpush.bf16.msrb.mxu1 %v1480_v20  ;;  %v1375_v20 = vld [vmem:[#allocation5] sm:$0xf] }
 0x180   : > { %1031 = vmatpush.bf16.msrb.mxu2 %v1428_v4 }
 0x182   : > { %1044 = vmatpush.bf16.msrb.mxu3 %v1492_v6  ;;  %1006 = vmatpush.bf16.msrb.mxu0 %v1416_v17  ;;  %v1460_v6 = vor.u32 %v1529_v57, %v1457_v61 }
 0x183   : > { %1020 = vmatpush.bf16.msrb.mxu1 %v1472_v33 }
 0x184   : > { %1032 = vmatpush.bf16.msrb.mxu2 %v1420_v21  ;;  %v1510_v21 = vld [vmem:[#allocation5 + $0x4] sm:$0xf0] }
 0x186   : > { %1045 = vmatpush.bf16.msrb.mxu3 %v1484_v25  ;;  %1007 = vmatpush.bf16.msrb.mxu0 %v1408_v32  ;;  %v1439_v25 = vld [vmem:[#allocation5 + $0x80] sm:$0xf]  ;;  %v1441_v32 = vld [vmem:[#allocation5 + $0x88] sm:$0xf0] }
 0x187   : > { %1021 = vmatpush.bf16.msrb.mxu1 %v1464_v44  ;;  %v1440_v37 = vor.u32 %v1526_v28, %v1439_v25 }
 0x188   : > { %1033 = vmatpush.bf16.msrb.mxu2 %v1412_v34 }
 0x18a   : > { %1046 = vmatpush.bf16.msrb.mxu3 %v1476_v35  ;;  %1008 = vmatpush.bf16.msrb.mxu0 %v1400_v40 }
 0x18b   : > { %1022 = vmatpush.bf16.msrb.mxu1 %v1456_v62 }
 0x18c   : > { %1034 = vmatpush.bf16.msrb.mxu2 %v1404_v45 }
 0x18e   : > { %1047 = vmatpush.bf16.msrb.mxu3 %v1468_v49  ;;  %1009 = vmatpush.bf16.msrb.mxu0 %v1392_v60 }
 0x192   : > { %1048 = vmatpush.bf16.msrb.mxu3 %v1460_v6  ;;  %1010 = vmatpush.bf16.msrb.mxu0 %v1384_v19 }
 0x196   : > { %1049 = vmatpush.bf16.msrb.mxu3 %v1452_v27 }
 0x1bd   : > { %v506_v31 = vpop.permute.xlu2 %505  ;;  %v501_v39 = vpop.permute.xlu0 %500 }
 0x1be   : > { %v2079_v53 = vmul.f32 %v506_v31, %v2017_v7  ;;  %v2082_v54 = vmul.f32 %v501_v39, %v1999_v0  ;;  %v2085_v58 = vmul.f32 %v506_v31, %v2020_v8  ;;  %v2088_v59 = vmul.f32 %v501_v39, %v2002_v1  ;;  %v1447_v0 = vld [vmem:[#allocation5 + $0x90] sm:$0xf]  ;;  %v1385_v8 = vld [vmem:[#allocation5 + $0x18] sm:$0xf0] }
 0x1bf   : > { %v1396_v7 = vor.u32 %v1513_v55, %v1393_v56  ;;  %v1448_v23 = vor.u32 %v1528_v9, %v1447_v0  ;;  %v1388_v24 = vor.u32 %v1511_v10, %v1385_v8  ;;  %v1376_v31 = vor.u32 %v1510_v21, %v1375_v20 }
 0x1c0   : > { %v544_v1 = vadd.f32 %v2079_v53, %v2082_v54  ;;  %v553_v16 = vadd.f32 %v2085_v58, %v2088_v59 }
 0x1c1   : > { %1035 = vmatpush.bf16.msrb.mxu2 %v1396_v7  ;;  %1023 = vmatpush.bf16.msrb.mxu1 %v1448_v23 }
 0x1c2   : > { %1011 = vmatpush.bf16.msrb.mxu0 %v1376_v31 }
 0x1c5   : > { %v516_v4 = vpop.permute.xlu2 %515  ;;  %1036 = vmatpush.bf16.msrb.mxu2 %v1388_v24  ;;  %1024 = vmatpush.bf16.msrb.mxu1 %v1440_v37 }
 0x1c6   : > { %v2101_v22 = vmul.f32 %v516_v4, %v2029_v12  ;;  %v2104_v26 = vmul.f32 %v516_v4, %v2032_v13  ;;  %v1525_v12 = vld [vmem:[#allocation5 + $0x84] sm:$0xf] }
 0x1c7   : > { %v1444_v42 = vor.u32 %v1525_v12, %v1441_v32 }
 0x1c8   : > { %v527_v36 = vmax.f32 %v2079_v53, %v2101_v22  ;;  %v536_v39 = vmax.f32 %v2085_v58, %v2104_v26 }
 0x1c9   : > { %1037 = vmatpush.bf16.msrb.mxu2 %v1380_v38  ;;  %1050 = vmatpush.bf16.msrb.mxu3 %v1444_v42 }
 0x1d4   : > { %v511_v11 = vpop.permute.xlu1 %510 }
 0x1d5   : > { %v2095_v17 = vmul.f32 %v511_v11, %v2005_v2  ;;  %v2098_v18 = vmul.f32 %v511_v11, %v2012_v5 }
 0x1d7   : > { %v545_v2 = vadd.f32 %v544_v1, %v2095_v17  ;;  %v554_v5 = vadd.f32 %v553_v16, %v2098_v18  ;;  %v526_v33 = vmax.f32 %v2082_v54, %v2095_v17  ;;  %v535_v34 = vmax.f32 %v2088_v59, %v2098_v18 }
 0x1d9   : > { %v546_v13 = vadd.f32 %v545_v2, %v2101_v22  ;;  %v555_v35 = vadd.f32 %v554_v5, %v2104_v26  ;;  %v528_v43 = vmax.f32 %v526_v33, %v527_v36  ;;  %v537_v44 = vmax.f32 %v535_v34, %v536_v39 }
 0x1db   : > { %v547_v40 = vrot.slane %v546_v13, 4  ;;  %v556_v41 = vrot.slane %v555_v35, 4  ;;  %v529_v49 = vrot.slane %v528_v43, 4  ;;  %v538_v50 = vrot.slane %v537_v44, 4 }
 0x1dd   : > { %v548_v45 = vadd.f32 %v547_v40, %v546_v13  ;;  %v557_v46 = vadd.f32 %v556_v41, %v555_v35  ;;  %v530_v61 = vmax.f32 %v528_v43, %v529_v49  ;;  %v539_v62 = vmax.f32 %v537_v44, %v538_v50 }
 0x1df   : > { %v549_v47 = vrot.slane %v548_v45, 2  ;;  %v558_v48 = vrot.slane %v557_v46, 2  ;;  %v531_v4 = vrot.slane %v530_v61, 2  ;;  %v540_v6 = vrot.slane %v539_v62, 2 }
 0x1e1   : > { %v550_v51 = vadd.f32 %v549_v47, %v548_v45  ;;  %v559_v52 = vadd.f32 %v558_v48, %v557_v46  ;;  %v532_v9 = vmax.f32 %v530_v61, %v531_v4  ;;  %v541_v10 = vmax.f32 %v539_v62, %v540_v6 }
 0x1e3   : > { %v551_v55 = vrot.slane %v550_v51, 1  ;;  %v560_v56 = vrot.slane %v559_v52, 1  ;;  %v533_v8 = vrot.slane %v532_v9, 1  ;;  %v542_v1 = vrot.slane %v541_v10, 1 }
 0x1e5   : > { %v552_v57 = vadd.f32 %v551_v55, %v550_v51  ;;  %v561_v60 = vadd.f32 %v560_v56, %v559_v52  ;;  %v534_v11 = vmax.f32 %v532_v9, %v533_v8  ;;  %v543_v14 = vmax.f32 %v541_v10, %v542_v1  ;;  %v1676_v8 = vld [vmem:[%s1988_s16] sm:$0xff] }
 0x1e7   : > { %v562_v7 = vmul.f32 0.03125, %v552_v57  ;;  %v563_v63 = vmul.f32 0.03125, %v561_v60  ;;  %v628_v15 = vpack.c.bf16 %v534_v11, %v534_v11  ;;  %v629_v16 = vpack.c.bf16 %v543_v14, %v543_v14  ;;  %v1677_v11 = vld [vmem:[%s1988_s16 + $0x10] sm:$0xff] }
 0x1e9   : > { %v630_v3 = vpack.c.bf16 %v562_v7, %v562_v7  ;;  %v631_v0 = vpack.c.bf16 %v563_v63, %v563_v63 }
 0x1eb   : > { %800 = vmatmul.bf16.vlgmr.msra.gmra.mxu0 %v630_v3  ;;  %813 = vmatmul.bf16.vlgmr.msra.gmra.mxu1 %v631_v0 }
 0x1ec   : > { %826 = vmatmul.bf16.vlgmr.msra.gmra.mxu2 %v630_v3  ;;  %839 = vmatmul.bf16.vlgmr.msra.gmra.mxu3 %v631_v0 }
 0x1fb   : > { %1012 = vmatmul.bf16.vlgmr.msrb.gmra.mxu0 %v628_v15  ;;  %1025 = vmatmul.bf16.vlgmr.msrb.gmra.mxu1 %v629_v16 }
 0x1fc   : > { %1038 = vmatmul.bf16.vlgmr.msrb.gmra.mxu2 %v628_v15  ;;  %1051 = vmatmul.bf16.vlgmr.msrb.gmra.mxu3 %v629_v16  ;;  %v1678_v15 = vld [vmem:[%s1988_s16 + $0x20] sm:$0xff] }
 0x268   : > { %v801_v19 = vpop.f32.mrf.mxu0  ;;  %v814_v20 = vpop.f32.mrf.mxu1 }
 0x269   : > { %v815_v2 = vadd.f32 %v814_v20, %v801_v19  ;;  %v1679_v20 = vld [vmem:[%s1988_s16 + $0x30] sm:$0xff] }
 0x26f   : > { %v827_v21 = vpop.f32.mrf.mxu2  ;;  %v840_v23 = vpop.f32.mrf.mxu3 }
 0x270   : > { %v803_v24 = vpop.f32.mrf.mxu0  ;;  %v816_v25 = vpop.f32.mrf.mxu1  ;;  %v841_v32 = vadd.f32 %v840_v23, %v827_v21 }
 0x277   : > { %v829_v5 = vpop.f32.mrf.mxu2  ;;  %v842_v27 = vpop.f32.mrf.mxu3 }
 0x278   : > { %v1013_v28 = vpop.f32.mrf.mxu0  ;;  %v1026_v29 = vpop.f32.mrf.mxu1  ;;  %v1681_v27 = vld [vmem:[%s1988_s16 + $0x18] sm:$0xff] }
 0x279   : > { %v1014_v30 = vadd.f32 %v1013_v28, %v815_v2  ;;  %v1680_v2 = vld [vmem:[%s1988_s16 + $0x8] sm:$0xff] }
 0x27b   : > { %v1027_v31 = vadd.f32 %v1026_v29, %v1014_v30  ;;  %v1682_v29 = vld [vmem:[%s1988_s16 + $0x28] sm:$0xff] }
 0x27d   : > { %v1501_v12 = vmul.f32 -1.442695, %v1027_v31  ;;  %v1683_v31 = vld [vmem:[%s1988_s16 + $0x38] sm:$0xff] }
 0x27f   : > { %1668 = vpow2.f32 %v1501_v12  ;;  %v1039_v33 = vpop.f32.mrf.mxu2  ;;  %v1052_v34 = vpop.f32.mrf.mxu3 }
 0x280   : > { %v1040_v13 = vadd.f32 %v1039_v33, %v841_v32  ;;  %v1015_v35 = vpop.f32.mrf.mxu0  ;;  %v1028_v36 = vpop.f32.mrf.mxu1 }
 0x282   : > { %v1053_v37 = vadd.f32 %v1052_v34, %v1040_v13 }
 0x284   : > { %v1502_v38 = vmul.f32 -1.442695, %v1053_v37 }
 0x285   : > { %v1669_v39 = vpop.eup %1668 }
 0x286   : > { %v1062_v40 = vadd.f32 1.0, %v1669_v39  ;;  %1670 = vpow2.f32 %v1502_v38 }
 0x287   : > { %v1041_v41 = vpop.f32.mrf.mxu2  ;;  %v1054_v42 = vpop.f32.mrf.mxu3 }
 0x288   : > { %1672 = vrcp.f32 %v1062_v40  ;;  %v1075_v48 = vand.u32 2147483648, %v1062_v40  ;;  %v1073_v50 = vand.u32 2147483647, %v1062_v40  ;;  %vm1069_vm3 = vweird.f32 %v1062_v40 }
 0x28a   : > { %v1076_v55 = vor.u32 1.1754944e-38, %v1075_v48  ;;  %vm1074_vm5 = vcmp.eq.f32.partialorder %v1073_v50, 8.507059e+37 }
 0x28c   : > { %v1671_v43 = vpop.eup %1670 }
 0x28d   : > { %v1063_v44 = vadd.f32 1.0, %v1671_v43 }
 0x28e   : > { %v1673_v45 = vpop.eup %1672 }
 0x28f   : > { %v1065_v46 = vmul.f32 %v1673_v45, %v1062_v40  ;;  %1674 = vrcp.f32 %v1063_v44  ;;  %vm1070_vm2 = vweird.f32 %v1673_v45  ;;  %v1090_v7 = vand.u32 2147483648, %v1063_v44 }
 0x290   : > { %vm1071_vm4 = vmor %vm1069_vm3, %vm1070_vm2  ;;  %v1088_v3 = vand.u32 2147483647, %v1063_v44  ;;  %vm1084_vm7 = vweird.f32 %v1063_v44 }
 0x291   : > { %v1066_v47 = vsub.f32 1.0, %v1065_v46  ;;  %v1091_v19 = vor.u32 1.1754944e-38, %v1090_v7 }
 0x292   : > { %vm1089_vm9 = vcmp.eq.f32.partialorder %v1088_v3, 8.507059e+37 }
 0x293   : > { %v1067_v49 = vmul.f32 %v1673_v45, %v1066_v47 }
 0x295   : > { %v1675_v51 = vpop.eup %1674  ;;  %v1068_v52 = vadd.f32 %v1673_v45, %v1067_v49 }
 0x296   : > { %v1080_v56 = vmul.f32 %v1675_v51, %v1063_v44  ;;  %vm1085_vm6 = vweird.f32 %v1675_v51 }
 0x297   : > { %v1072_v57 = vsel %vm1071_vm4, %v1673_v45, %v1068_v52  ;;  %vm1086_vm8 = vmor %vm1084_vm7, %vm1085_vm6 }
 0x298   : > { %v1077_v60 = vsel %vm1074_vm5, %v1076_v55, %v1072_v57  ;;  %v1081_v61 = vsub.f32 1.0, %v1080_v56 }
 0x299   : > { %v1094_v62 = vperm.slane %v1077_v60, 0 }
 0x29a   : > { %v1082_v63 = vmul.f32 %v1675_v51, %v1081_v61 }
 0x29b   : > { %v1096_v0 = vmul.f32 %v1094_v62, %v2082_v54  ;;  %v1098_v4 = vmul.f32 %v1094_v62, %v2079_v53  ;;  %v1100_v6 = vmul.f32 %v1094_v62, %v2095_v17  ;;  %v1102_v9 = vmul.f32 %v1094_v62, %v2101_v22 }
 0x29c   : > { %v1083_v10 = vadd.f32 %v1675_v51, %v1082_v63 }
 0x29d   : > { %v1104_v1 = vadd.f32 %v1676_v8, %v1096_v0  ;;  %v1106_v14 = vadd.f32 %v1677_v11, %v1098_v4  ;;  %v1108_v16 = vadd.f32 %v1678_v15, %v1100_v6  ;;  %v1110_v54 = vadd.f32 %v1679_v20, %v1102_v9 }
 0x29e   : > { %v1087_v21 = vsel %vm1086_vm8, %v1675_v51, %v1083_v10 }
 0x29f   : > { %1112 = vst [vmem:[%s277_s12] sm:$0xff] %v1104_v1  ;;  %v1092_v53 = vsel %vm1089_vm9, %v1091_v19, %v1087_v21 }
 0x2a0   : > { %1114 = vst [vmem:[%s277_s12 + $0x10] sm:$0xff] %v1106_v14  ;;  %v1095_v17 = vperm.slane %v1092_v53, 0 }
 0x2a1   : > { %1116 = vst [vmem:[%s277_s12 + $0x20] sm:$0xff] %v1108_v16 }
 0x2a2   : > { %1118 = vst [vmem:[%s277_s12 + $0x30] sm:$0xff] %v1110_v54  ;;  %v1097_v22 = vmul.f32 %v1095_v17, %v2088_v59  ;;  %v1099_v23 = vmul.f32 %v1095_v17, %v2085_v58  ;;  %v1101_v24 = vmul.f32 %v1095_v17, %v2098_v18  ;;  %v1103_v25 = vmul.f32 %v1095_v17, %v2104_v26 }
 0x2a4   : > { %v1105_v5 = vadd.f32 %v1680_v2, %v1097_v22  ;;  %v1107_v28 = vadd.f32 %v1681_v27, %v1099_v23  ;;  %v1109_v30 = vadd.f32 %v1682_v29, %v1101_v24  ;;  %v1111_v12 = vadd.f32 %v1683_v31, %v1103_v25 }
 0x2a6   : > { %1113 = vst [vmem:[%s277_s12 + $0x8] sm:$0xff] %v1105_v5 }
 0x2a7   : > { %1115 = vst [vmem:[%s277_s12 + $0x18] sm:$0xff] %v1107_v28 }
 0x2a8   : > { %1117 = vst [vmem:[%s277_s12 + $0x28] sm:$0xff] %v1109_v30 }
 0x2a9   : > { %1119 = vst [vmem:[%s277_s12 + $0x38] sm:$0xff] %v1111_v12 }
 0x2aa   : > { %1801 = shalt.err (!%p1798_p10)
}
 0x2ab   : > { %s1854_s8 = smov 256   ;;  %s1855_s10 = smov 16  }
 0x2ac   : > { %1584 = dma.vmem_to_hbm [thread:$0]  (%p1952_p3), %s1134_s22, 1024, %s1136_s13, %s1121_s6, %s1854_s8, %s1854_s8, %s1855_s10  }
 0x2ad PF: > { %s1150_s11 = sand.u32 1, %s1832_s18   ;;  %p2180_p12 = scmp.ge.s32.totalorder %s1844_s21, 2 }
 0x2ae   : > { %s1151_s12 = scalar_lea.sflag [#allocation4], %s1150_s11 }
 0x2af   : > { %p1598_p13 = pnand %p2180_p12, %p1921_p6 }
 0x2b1   : > { %p1599_p0 = pneg %p1598_p13 }
 0x2b3   : > { %1827 = dma.done.wait (%p1599_p0), %s1151_s12, 1024  }
 0x2b4   : > { %1829 = vsyncadd (%p1599_p0), %s1151_s12, 4294966272  ;;  %p19_p5 = scmp.ge.s32.totalorder %s1942_s14, 4   ;;  %s2181_s18 = smov %s1836_s19 }
 0x2b5   : > { %s2182_s19 = smov %s1840_s20  ;;  %s2183_s20 = smov %s1958_s23 }
 0x2b6   : > { %s2184_s21 = smov %s1942_s14  ;;  %21 = sbr.rel (!%p19_p5) target bundleno = 6 (0x6), region = 93 }
 0x2bb   :  { %1157 = vsyncpa [#allocation3], 1 }
 0x2bc   :  { %1159 = vsyncpa [#allocation3 + $0x1], 1 }
 0x2bd   :  { %1160 = vsyncpa [#allocation6], 1 }
 0x2be   :  { %1161 = vsyncpa [#allocation4], 1 }
 0x2bf   :  { %1163 = vsyncpa [#allocation4 + $0x1], 1 }

// kernel: tpu_custom_call.1
= control target key start
LH: loop header
LB: loop body
LE: loop exit
PB: predicated region body
PF: predicated region fallthrough
CT: control target
= control target key end

     0   :  { %10 = vsyncpa [#allocation3], 0  ;;  %s2169_s0 = inlined_call_operand.hbm [shape: f32[2,32,256], index: 0, kind: input, shape index: {}]   ;;  %s2170_s1 = inlined_call_operand.vmem [shape: f32[32,2], index: 1, kind: input, shape index: {}]   ;;  %s2171_s2 = inlined_call_operand.vmem [shape: f32[32,2], index: 2, kind: input, shape index: {}]   ;;  %s2172_s3 = inlined_call_operand.hbm [shape: bf16[256,256], index: 3, kind: input, shape index: {}]   ;;  %s2173_s4 = inlined_call_operand.hbm [shape: bf16[256,256], index: 4, kind: input, shape index: {}]   ;;  %s2174_s5 = inlined_call_operand.hbm [shape: f32[2,32,256], index: 5, kind: output, shape index: {}]  }
   0x1   :  { %12 = vsyncpa [#allocation3 + $0x1], 0 }
   0x2   :  { %13 = vsyncpa [#allocation6], 0 }
   0x3   :  { %14 = vsyncpa [#allocation4], 0 }
   0x4   :  { %16 = vsyncpa [#allocation4 + $0x1], 0  ;;  %s1886_s18 = smov 0   ;;  %s1888_s19 = smov 0  }
   0x5   :  { %s1890_s20 = smov 0   ;;  %s1892_s21 = smov 0  }
   0x6 LB: > { %s1907_s22 = sadd.s32 4294967295, %s1844_s21   ;;  %s1228_s23 = sadd.s32 4294967294, %s1844_s21   ;;  %s1844_s21 = sphi %s1892_s21, %s2184_s21   ;;  %s1840_s20 = sphi %s1890_s20, %s2183_s20   ;;  %s1836_s19 = sphi %s1888_s19, %s2182_s19   ;;  %s1832_s18 = sphi %s1886_s18, %s2181_s18  }
   0x7   : > { %p42_p0 = scmp.ne.s32.totalorder %s1836_s19, %s1832_s18  ;;  %p43_p1 = scmp.eq.s32.totalorder %s1907_s22, 0 }
   0x8   : > { %p150_p2 = scmp.eq.s32.totalorder %s1907_s22, 1  ;;  %p156_p3 = scmp.eq.s32.totalorder %s1228_s23, 1 }
   0x9   : > { %p1916_p4 = por %p43_p1, %p42_p0  ;;  %p1229_p5 = scmp.ge.s32.totalorder %s1844_s21, 1 }
   0xa   : > { %p1921_p6 = por %p156_p3, %p42_p0  ;;  %p163_p7 = scmp.lt.s32.totalorder %s1844_s21, 3 }
   0xb   : > { %s180_s28 = sshll.u32 %s2172_s3, 4  ;;  %s1846_s30 = smov [#allocation5]   ;;  %s181_s28 = int_to_ptr.hbm [resolvable:$true] %s180_s28 }
   0xc   : > { %p1929_p8 = pnand %p1229_p5, %p163_p7  ;;  %s182_s6 = sshll.u32 %s1846_s30, 4  ;;  %s183_s6 = int_to_ptr.vmem [resolvable:$true] %s182_s6 }
   0xd   : > { %s194_s9 = sshll.u32 %s2173_s4, 4  ;;  %s1847_s10 = smov 128   ;;  %s195_s9 = int_to_ptr.hbm [resolvable:$true] %s194_s9 }
   0xe   : > { %p1586_p9 = pneg %p1929_p8  ;;  %s1848_s11 = smov 8  }
   0xf   : > { %s1849_s12 = smov [#allocation7]   ;;  %s1942_s14 = sadd.s32 1, %s1844_s21  }
  0x10   : > { %p1587_p10 = pnand %p1586_p9, %p43_p1  ;;  %s196_s13 = sshll.u32 %s1849_s12, 4  ;;  %s197_s13 = int_to_ptr.vmem [resolvable:$true] %s196_s13 }
  0x11   : > { %s29_s15 = sadd.s32 1, %s1840_s20  ;;  %s26_s16 = ssub.s32 %s1844_s21, %s1942_s14 }
  0x12   : > { %1589 = dma.hbm_to_vmem [thread:$0]  (!%p1587_p10), %s181_s28, 4096, %s183_s6, [#allocation6], %s1847_s10, %s1847_s10, %s1848_s11  }
  0x13   : > { %1592 = dma.hbm_to_vmem [thread:$0]  (!%p1587_p10), %s195_s9, 4096, %s197_s13, [#allocation6], %s1847_s10, %s1847_s10, %s1848_s11  }
  0x14   : > { %p36_p12 = scmp.ne.s32.totalorder %s1840_s20, %s1836_s19  ;;  %p27_p13 = scmp.eq.s32.totalorder %s26_s16, 0 }
  0x15   : > { %p37_p0 = scmp.eq.s32.totalorder %s1844_s21, 0  ;;  %p1603_p5 = scmp.lt.s32.totalorder %s1844_s21, 2 }
  0x16   : > { %p1952_p3 = por %p150_p2, %p36_p12  ;;  %s210_s26 = sand.u32 1, %s1840_s20  }
  0x17   : > { %s1958_s23 = scalar_select %p27_p13, %s1840_s20, %s29_s15  }
  0x18   : > { %p38_p7 = por %p37_p0, %p36_p12  ;;  %s1233_s27 = sshll.u32 %s210_s26, 6 }
  0x19   : > { %s1508_s28 = sshll.u32 %s1844_s21, 6  ;;  %s214_s8 = scalar_lea.vmem [#allocation2], %s1233_s27 }
  0x1a   : > { %s219_s7 = scalar_lea.hbm %s2169_s0, %s1508_s28  ;;  %s222_s9 = sshll.u32 %s214_s8, 4  ;;  %s223_s9 = int_to_ptr.vmem [resolvable:$true] %s222_s9 }
  0x1b   : > { %s220_s10 = sshll.u32 %s219_s7, 4  ;;  %p1965_p2 = pnand %p1603_p5, %p38_p7  ;;  %s221_s10 = int_to_ptr.hbm [resolvable:$true] %s220_s10 }
  0x1c   : > { %s211_s12 = scalar_lea.sflag [#allocation3], %s210_s26  ;;  %s1744_s13 = sshra.s32 %s221_s10, 4  ;;  %s1745_s13 = int_to_ptr.hbm [resolvable:$true] %s1744_s13 }
  0x1d   : > { %s1746_s15 = scalar_lea.hbm %s1745_s13, 64  ;;  %p1748_p10 = pneg %p1965_p2 }
  0x1e   : > { %p1747_p9 = scmp.ne.s32.totalorder %s1745_s13, %s1746_s15  ;;  %s1751_s28 = scalar_lea.hbm %s2169_s0, 128 }
  0x1f   : > { %p1752_p0 = scmp.lt.s32.totalorder %s1745_s13, %s2169_s0  ;;  %p1753_p5 = scmp.lt.s32.totalorder %s1751_s28, %s1746_s15 }
  0x20   : > { %p1749_p12 = pnand %p1748_p10, %p1747_p9 }
  0x21   : > { %p1754_p7 = por %p1753_p5, %p1752_p0 }
  0x22   : > { %p1750_p13 = pneg %p1749_p12 }
  0x24   : > { %p1755_p11 = pnand %p1754_p7, %p1750_p13 }
  0x26   : > { %1758 = shalt.err (!%p1755_p11)
}
  0x27   : > { %s1850_s26 = smov 256   ;;  %s1851_s7 = smov 16  }
  0x28   : > { %1596 = dma.hbm_to_vmem [thread:$0]  (!%p1965_p2), %s221_s10, 1024, %s223_s9, %s211_s12, %s1850_s26, %s1850_s26, %s1851_s7  }
  0x29   : > { %234 = sbr.rel (%p1929_p8) target bundleno = 685 (0x2ad), region = 40  ;;  %s1982_s8 = sand.u32 (!%p1929_p8), 1, %s1836_s19  }
  0x2a   : > { %s1237_s13 = sshll.u32 (!%p1929_p8), %s1982_s8, 6  ;;  %s237_s15 = scalar_lea.sflag (!%p1929_p8), [#allocation3], %s1982_s8 }
  0x2b   : > { %s1988_s16 = scalar_lea.vmem (!%p1929_p8), [#allocation2], %s1237_s13 }
  0x2e   : > { %1819 = dma.done.wait (%p1916_p4), %s237_s15, 1024  }
  0x2f   : > { %1821 = vsyncadd (%p1916_p4), %s237_s15, 4294966272 }
  0x30   : > { %1823 = dma.done.wait (%p43_p1), [#allocation6], 8192  }
  0x31   : > { %1825 = vsyncadd (%p43_p1), [#allocation6], 4294959104  ;;  %v1999_v0 = vld [vmem:[%s1988_s16] sm:$0xff]  ;;  %v2002_v1 = vld [vmem:[%s1988_s16 + $0x8] sm:$0xff]  ;;  %vm326_vm0 = vcmask 7168   ;;  %vm368_vm1 = vcmask 15368  }
  0x32   : > { %v2005_v2 = vld [vmem:[%s1988_s16 + $0x20] sm:$0xff]  ;;  %v298_v3 = vadd.f32 %v2002_v1, %v1999_v0  ;;  %v286_v4 = vmax.f32 %v1999_v0, %v2002_v1  ;;  %v2012_v5 = vld [vmem:[%s1988_s16 + $0x28] sm:$0xff]  ;;  %v2017_v7 = vld [vmem:[%s1988_s16 + $0x10] sm:$0xff]  ;;  %s1852_s10 = smov 127   ;;  %s1573_s11 = sshll.u32 %s1907_s22, 6 }
  0x33   : > { %v304_v6 = vadd.f32 %v2012_v5, %v2005_v2  ;;  %v2020_v8 = vld [vmem:[%s1988_s16 + $0x18] sm:$0xff]  ;;  %v292_v11 = vmax.f32 %v2005_v2, %v2012_v5  ;;  %v2029_v12 = vld [vmem:[%s1988_s16 + $0x30] sm:$0xff]  ;;  %v314_v19 = vld [vmem:[%s2170_s1] sm:$0xff]  ;;  %s277_s12 = scalar_lea.vmem [#allocation8], %s1237_s13  ;;  %s1132_s30 = scalar_lea.hbm %s2174_s5, %s1573_s11 }
  0x34   : > { %299 = vadd.xlane.f32.xlu0 %v298_v3  ;;  %287 = vmax.xlane.f32.xlu1 %v286_v4  ;;  %v301_v9 = vadd.f32 %v2020_v8, %v2017_v7  ;;  %v289_v10 = vmax.f32 %v2017_v7, %v2020_v8  ;;  %v2032_v13 = vld [vmem:[%s1988_s16 + $0x38] sm:$0xff]  ;;  %v315_v22 = vld [vmem:[%s2170_s1 + $0x8] sm:$0xff]  ;;  %v316_v24 = vld [vmem:[%s2170_s1 + $0x10] sm:$0xff]  ;;  %s1133_s22 = sshll.u32 %s277_s12, 4  ;;  %s1135_s13 = sshll.u32 %s1132_s30, 4  ;;  %s1134_s22 = int_to_ptr.vmem [resolvable:$true] %s1133_s22  ;;  %s1136_s13 = int_to_ptr.hbm [resolvable:$true] %s1135_s13 }
  0x35   : > { %305 = vadd.xlane.f32.xlu2 %v304_v6  ;;  %v307_v14 = vadd.f32 %v2032_v13, %v2029_v12  ;;  %v295_v15 = vmax.f32 %v2029_v12, %v2032_v13  ;;  %v317_v46 = vld [vmem:[%s2170_s1 + $0x18] sm:$0xff]  ;;  %s1121_s6 = scalar_lea.sflag [#allocation4], %s1982_s8  ;;  %s1788_s26 = sshra.s32 %s1136_s13, 4  ;;  %s1789_s26 = int_to_ptr.hbm [resolvable:$true] %s1788_s26 }
  0x36   : > { %s1790_s7 = scalar_lea.hbm %s1789_s26, 64  ;;  %s1794_s29 = scalar_lea.hbm %s2174_s5, 128 }
  0x37   : > { %p1791_p1 = scmp.ne.s32.totalorder %s1789_s26, %s1790_s7  ;;  %p1795_p11 = scmp.lt.s32.totalorder %s1789_s26, %s2174_s5 }
  0x38   : > { %p1796_p2 = scmp.lt.s32.totalorder %s1794_s29, %s1790_s7 }
  0x39   : > { %p1792_p4 = pnand %p1791_p1, %p1952_p3 }
  0x3a   : > { %p1797_p9 = por %p1796_p2, %p1795_p11 }
  0x3b   : > { %p1793_p8 = pneg %p1792_p4 }
  0x3c   : > { %302 = vadd.xlane.f32.xlu0 %v301_v9  ;;  %290 = vmax.xlane.f32.xlu1 %v289_v10 }
  0x3d   : > { %293 = vmax.xlane.f32.xlu2 %v292_v11  ;;  %p1798_p10 = pnand %p1797_p9, %p1793_p8 }
  0x44   : > { %308 = vadd.xlane.f32.xlu0 %v307_v14  ;;  %296 = vmax.xlane.f32.xlu1 %v295_v15 }
  0xa7   : > { %v300_v16 = vpop.xlane.xlu0 %299  ;;  %v288_v17 = vpop.xlane.xlu1 %287 }
  0xa8   : > { %v306_v18 = vpop.xlane.xlu2 %305  ;;  %v310_v20 = vmul.f32 0.00390625, %v300_v16  ;;  %v322_v21 = vmul.f32 %v314_v19, %v288_v17 }
  0xa9   : > { %v312_v23 = vmul.f32 0.00390625, %v306_v18 }
  0xaa   : > { %v341_v27 = vmul.f32 %v314_v19, %v310_v20  ;;  %v327_v31 = vsel %vm326_vm0, %v322_v21, 0.0  ;;  %v369_v40 = vsel %vm368_vm1, %v322_v21, 0.0 }
  0xab   : > { %v343_v36 = vmul.f32 %v316_v24, %v312_v23 }
  0xac   : > { %v345_v39 = vsel %vm326_vm0, %v341_v27, 0.0  ;;  %v383_v47 = vsel %vm368_vm1, %v341_v27, 0.0 }
  0xad   : > { %v348_v48 = vsel %vm326_vm0, %v343_v36, 0.0  ;;  %v386_v57 = vsel %vm368_vm1, %v343_v36, 0.0 }
  0xaf   : > { %v303_v25 = vpop.xlane.xlu0 %302  ;;  %v291_v26 = vpop.xlane.xlu1 %290 }
  0xb0   : > { %v311_v28 = vmul.f32 0.00390625, %v303_v25  ;;  %v323_v29 = vmul.f32 %v315_v22, %v291_v26  ;;  %v294_v30 = vpop.xlane.xlu2 %293 }
  0xb1   : > { %v324_v32 = vmul.f32 %v316_v24, %v294_v30 }
  0xb2   : > { %v342_v33 = vmul.f32 %v315_v22, %v311_v28  ;;  %v328_v34 = vsel %vm326_vm0, %v323_v29, 0.0  ;;  %v370_v35 = vsel %vm368_vm1, %v323_v29, 0.0 }
  0xb3   : > { %v329_v37 = vadd.f32 %v328_v34, %v327_v31  ;;  %v330_v38 = vsel %vm326_vm0, %v324_v32, 0.0  ;;  %v371_v44 = vadd.f32 %v370_v35, %v369_v40  ;;  %v372_v49 = vsel %vm368_vm1, %v324_v32, 0.0  ;;  %v320_v40 = vld [vmem:[%s2171_s2 + $0x10] sm:$0xff] }
  0xb4   : > { %v346_v41 = vsel %vm326_vm0, %v342_v33, 0.0  ;;  %v384_v42 = vsel %vm368_vm1, %v342_v33, 0.0 }
  0xb5   : > { %v347_v43 = vadd.f32 %v346_v41, %v345_v39  ;;  %v331_v45 = vadd.f32 %v330_v38, %v329_v37  ;;  %v385_v50 = vadd.f32 %v384_v42, %v383_v47  ;;  %v373_v56 = vadd.f32 %v372_v49, %v371_v44  ;;  %v319_v41 = vld [vmem:[%s2171_s2 + $0x8] sm:$0xff]  ;;  %v318_v42 = vld [vmem:[%s2171_s2] sm:$0xff]  ;;  %v321_v44 = vld [vmem:[%s2171_s2 + $0x18] sm:$0xff] }
  0xb7   : > { %v349_v51 = vadd.f32 %v348_v48, %v347_v43  ;;  %v309_v52 = vpop.xlane.xlu0 %308  ;;  %v297_v53 = vpop.xlane.xlu1 %296  ;;  %v387_v61 = vadd.f32 %v386_v57, %v385_v50 }
  0xb8   : > { %v313_v54 = vmul.f32 0.00390625, %v309_v52  ;;  %v325_v55 = vmul.f32 %v317_v46, %v297_v53 }
  0xba   : > { %v344_v58 = vmul.f32 %v317_v46, %v313_v54  ;;  %v332_v59 = vsel %vm326_vm0, %v325_v55, 0.0  ;;  %v374_v60 = vsel %vm368_vm1, %v325_v55, 0.0  ;;  %v1853_v54 = vmov 0  }
  0xbb   : > { %v333_v62 = vadd.f32 %v332_v59, %v331_v45  ;;  %v375_v63 = vadd.f32 %v374_v60, %v373_v56  ;;  %1649 = vset.pattern.permute.xlu0 %v1853_v54  ;;  %1651 = vset.pattern.permute.xlu1 %v1853_v54 }
  0xbc   : > { %v350_v3 = vsel %vm326_vm0, %v344_v58, 0.0  ;;  %v388_v4 = vsel %vm368_vm1, %v344_v58, 0.0  ;;  %1650 = vset.pattern.permute.xlu2 %v1853_v54 }
  0xbd   : > { %v351_v6 = vadd.f32 %v350_v3, %v349_v51  ;;  %v389_v9 = vadd.f32 %v388_v4, %v387_v61  ;;  %v334_v10 = vrot.slane %v333_v62, 4  ;;  %v376_v11 = vrot.slane %v375_v63, 4 }
  0xbf   : > { %v352_v14 = vrot.slane %v351_v6, 4  ;;  %v390_v15 = vrot.slane %v389_v9, 4  ;;  %v335_v16 = vadd.f32 %v334_v10, %v333_v62  ;;  %v377_v17 = vadd.f32 %v376_v11, %v375_v63 }
  0xc1   : > { %v353_v18 = vadd.f32 %v352_v14, %v351_v6  ;;  %v391_v19 = vadd.f32 %v390_v15, %v389_v9  ;;  %v336_v20 = vrot.slane %v335_v16, 2  ;;  %v378_v21 = vrot.slane %v377_v17, 2 }
  0xc3   : > { %v354_v22 = vrot.slane %v353_v18, 2  ;;  %v392_v23 = vrot.slane %v391_v19, 2  ;;  %v337_v24 = vadd.f32 %v336_v20, %v335_v16  ;;  %v379_v25 = vadd.f32 %v378_v21, %v377_v17 }
  0xc5   : > { %v355_v26 = vadd.f32 %v354_v22, %v353_v18  ;;  %v393_v27 = vadd.f32 %v392_v23, %v391_v19  ;;  %v338_v28 = vrot.slane %v337_v24, 1  ;;  %v380_v29 = vrot.slane %v379_v25, 1 }
  0xc7   : > { %v356_v30 = vrot.slane %v355_v26, 1  ;;  %v394_v31 = vrot.slane %v393_v27, 1  ;;  %v339_v32 = vadd.f32 %v338_v28, %v337_v24  ;;  %v381_v33 = vadd.f32 %v380_v29, %v379_v25 }
  0xc9   : > { %v357_v34 = vadd.f32 %v356_v30, %v355_v26  ;;  %v395_v35 = vadd.f32 %v394_v31, %v393_v27  ;;  %v340_v38 = vmax.f32 %v339_v32, 0.0  ;;  %v382_v39 = vmax.f32 %v381_v33, 0.0 }
  0xcb   : > { %v358_v36 = vmax.f32 %v357_v34, 0.0  ;;  %v396_v37 = vmax.f32 %v395_v35, 0.0 }
  0xcd   : > { %v397_v43 = vadd.f32 %v396_v37, %v382_v39  ;;  %v359_v45 = vadd.f32 %v358_v36, %v340_v38 }
  0xcf   : > { %v400_v46 = vmul.f32 %v397_v43, %v320_v40  ;;  %v399_v47 = vmul.f32 %v397_v43, %v319_v41  ;;  %v398_v48 = vmul.f32 %v397_v43, %v318_v42  ;;  %v360_v49 = vmul.f32 %v359_v45, %v318_v42 }
  0xd0   : > { %v363_v50 = vmul.f32 %v359_v45, %v321_v44  ;;  %v362_v51 = vmul.f32 %v359_v45, %v320_v40  ;;  %v361_v52 = vmul.f32 %v359_v45, %v319_v41  ;;  %v401_v53 = vmul.f32 %v397_v43, %v321_v44 }
  0xd1   : > { %410 = vrot.lane.b32.xlu1 %v400_v46, %s1852_s10  ;;  %408 = vrot.lane.b32.xlu0 %v399_v47, %s1852_s10 }
  0xd2   : > { %406 = vrot.lane.b32.xlu2 %v398_v48, %s1852_s10 }
  0xda   : > { %412 = vrot.lane.b32.xlu2 %v401_v53, %s1852_s10 }
 0x12c   : > { %v407_v55 = vpop.permute.xlu2 %406 }
 0x12d   : > { %v418_v56 = vadd.f32 %v407_v55, %v360_v49 }
 0x12f   : > { %v1241_v57 = vmul.f32 -1.442695, %v418_v56 }
 0x131   : > { %1652 = vpow2.f32 %v1241_v57 }
 0x134   : > { %v413_v58 = vpop.permute.xlu2 %412 }
 0x135   : > { %v421_v61 = vadd.f32 %v413_v58, %v363_v50 }
 0x137   : > { %v1653_v59 = vpop.eup %1652  ;;  %v1244_v62 = vmul.f32 -1.442695, %v421_v61  ;;  %v1367_v61 = vld [vmem:[#allocation7 + $0xf0] sm:$0xf] }
 0x138   : > { %v434_v60 = vadd.f32 1.0, %v1653_v59  ;;  %v1303_v59 = vld [vmem:[#allocation7 + $0x70] sm:$0xf] }
 0x13a   : > { %1654 = vrcp.f32 %v434_v60  ;;  %v449_v14 = vand.u32 2147483648, %v434_v60  ;;  %v447_v16 = vand.u32 2147483647, %v434_v60  ;;  %vm443_vm3 = vweird.f32 %v434_v60 }
 0x13b   : > { %1656 = vpow2.f32 %v1244_v62 }
 0x13c   : > { %v450_v21 = vor.u32 1.1754944e-38, %v449_v14  ;;  %vm448_vm5 = vcmp.eq.f32.partialorder %v447_v16, 8.507059e+37  ;;  %v1295_v14 = vld [vmem:[#allocation7 + $0x60] sm:$0xf]  ;;  %v1554_v16 = vld [vmem:[#allocation7 + $0x64] sm:$0xf0] }
 0x140   : > { %v1655_v63 = vpop.eup %1654 }
 0x141   : > { %v439_v3 = vmul.f32 %v1655_v63, %v434_v60  ;;  %vm444_vm2 = vweird.f32 %v1655_v63  ;;  %v1657_v19 = vpop.eup %1656  ;;  %v1556_v60 = vld [vmem:[#allocation7 + $0x74] sm:$0xf0] }
 0x142   : > { %vm445_vm4 = vmor %vm443_vm3, %vm444_vm2  ;;  %v437_v23 = vadd.f32 1.0, %v1657_v19  ;;  %v1304_v62 = vor.u32 %v1556_v60, %v1303_v59  ;;  %v1296_v19 = vor.u32 %v1554_v16, %v1295_v14  ;;  %v1337_v59 = vld [vmem:[#allocation7 + $0xb8] sm:$0xf0]  ;;  %v1329_v14 = vld [vmem:[#allocation7 + $0xa8] sm:$0xf0] }
 0x143   : > { %v411_v4 = vpop.permute.xlu1 %410  ;;  %v409_v6 = vpop.permute.xlu0 %408  ;;  %v440_v9 = vsub.f32 1.0, %v439_v3  ;;  %v1555_v3 = vld [vmem:[#allocation7 + $0x74] sm:$0xf] }
 0x144   : > { %v420_v10 = vadd.f32 %v411_v4, %v362_v51  ;;  %v419_v11 = vadd.f32 %v409_v6, %v361_v52  ;;  %v494_v54 = vand.u32 2147483648, %v437_v23  ;;  %vm488_vm15 = vweird.f32 %v437_v23  ;;  %v1305_v4 = vld [vmem:[#allocation7 + $0x78] sm:$0xf0]  ;;  %792 = vmatpush.bf16.msra.mxu0 %v1304_v62  ;;  %v1263_v62 = vld [vmem:[#allocation7 + $0x20] sm:$0xf] }
 0x145   : > { %v441_v15 = vmul.f32 %v1655_v63, %v440_v9  ;;  %v492_v55 = vand.u32 2147483647, %v437_v23  ;;  %v1308_v9 = vor.u32 %v1555_v3, %v1305_v4  ;;  %v1327_v3 = vld [vmem:[#allocation7 + $0xa0] sm:$0xf] }
 0x146   : > { %v1243_v17 = vmul.f32 -1.442695, %v420_v10  ;;  %v1242_v18 = vmul.f32 -1.442695, %v419_v11  ;;  %v495_v57 = vor.u32 1.1754944e-38, %v494_v54 }
 0x147   : > { %v442_v20 = vadd.f32 %v1655_v63, %v441_v15  ;;  %vm493_vm1 = vcmp.eq.f32.partialorder %v492_v55, 8.507059e+37  ;;  %v1571_v10 = vld [vmem:[#allocation7 + $0xf4] sm:$0xf]  ;;  %v1369_v11 = vld [vmem:[#allocation7 + $0xf8] sm:$0xf0]  ;;  %818 = vmatpush.bf16.msra.mxu2 %v1308_v9 }
 0x148   : > { %1658 = vpow2.f32 %v1243_v17  ;;  %v1372_v15 = vor.u32 %v1571_v10, %v1369_v11  ;;  %v1359_v17 = vld [vmem:[#allocation7 + $0xe0] sm:$0xf]  ;;  %793 = vmatpush.bf16.msra.mxu0 %v1296_v19  ;;  %v1564_v54 = vld [vmem:[#allocation7 + $0xb4] sm:$0xf0]  ;;  %v1547_v55 = vld [vmem:[#allocation7 + $0x34] sm:$0xf] }
 0x149   : > { %1660 = vpow2.f32 %v1242_v18  ;;  %v446_v22 = vsel %vm445_vm4, %v1655_v63, %v442_v20  ;;  %v1572_v63 = vld [vmem:[#allocation7 + $0xf4] sm:$0xf0]  ;;  %v1570_v18 = vld [vmem:[#allocation7 + $0xe4] sm:$0xf0]  ;;  %v1545_v9 = vld [vmem:[#allocation7 + $0x24] sm:$0xf] }
 0x14a   : > { %v451_v24 = vsel %vm448_vm5, %v450_v21, %v446_v22  ;;  %1662 = vrcp.f32 %v437_v23  ;;  %v1368_v6 = vor.u32 %v1572_v63, %v1367_v61  ;;  %v1360_v20 = vor.u32 %v1570_v18, %v1359_v17  ;;  %v1553_v21 = vld [vmem:[#allocation7 + $0x64] sm:$0xf]  ;;  %v1297_v22 = vld [vmem:[#allocation7 + $0x68] sm:$0xf0]  ;;  %831 = vmatpush.bf16.msra.mxu3 %v1372_v15  ;;  %v1546_v63 = vld [vmem:[#allocation7 + $0x24] sm:$0xf0] }
 0x14b   : > { %500 = vperm.xlu0 %1649, %v451_v24   ;;  %v1300_v24 = vor.u32 %v1553_v21, %v1297_v22  ;;  %v1265_v10 = vld [vmem:[#allocation7 + $0x28] sm:$0xf0]  ;;  %v1561_v11 = vld [vmem:[#allocation7 + $0xa4] sm:$0xf]  ;;  %v1264_v15 = vor.u32 %v1546_v63, %v1263_v62  ;;  %v1255_v19 = vld [vmem:[#allocation7 + $0x10] sm:$0xf] }
 0x14c   : > { %805 = vmatpush.bf16.msra.mxu1 %v1368_v6  ;;  %v1562_v6 = vld [vmem:[#allocation7 + $0xa4] sm:$0xf0]  ;;  %v1268_v17 = vor.u32 %v1545_v9, %v1265_v10  ;;  %v1332_v18 = vor.u32 %v1561_v11, %v1329_v14  ;;  %v1319_v21 = vld [vmem:[#allocation7 + $0x90] sm:$0xf]  ;;  %v1425_v62 = vld [vmem:[#allocation5 + $0x68] sm:$0xf0] }
 0x14d   : > { %819 = vmatpush.bf16.msra.mxu2 %v1300_v24  ;;  %v1328_v16 = vor.u32 %v1562_v6, %v1327_v3  ;;  %v1543_v24 = vld [vmem:[#allocation7 + $0x14] sm:$0xf]  ;;  %v1537_v63 = vld [vmem:[#allocation5 + $0xe4] sm:$0xf]  ;;  %v1489_v3 = vld [vmem:[#allocation5 + $0xe8] sm:$0xf0] }
 0x14e   : > { %v1659_v25 = vpop.eup %1658  ;;  %v1492_v6 = vor.u32 %v1537_v63, %v1489_v3  ;;  %v1415_v9 = vld [vmem:[#allocation5 + $0x50] sm:$0xf]  ;;  %v1520_v10 = vld [vmem:[#allocation5 + $0x54] sm:$0xf0] }
 0x14f   : > { %v1661_v26 = vpop.eup %1660  ;;  %v436_v27 = vadd.f32 1.0, %v1659_v25  ;;  %v1361_v25 = vld [vmem:[#allocation7 + $0xe8] sm:$0xf0]  ;;  %v1479_v11 = vld [vmem:[#allocation5 + $0xd0] sm:$0xf] }
 0x150   : > { %v435_v28 = vadd.f32 1.0, %v1661_v26  ;;  %v1663_v29 = vpop.eup %1662  ;;  %806 = vmatpush.bf16.msra.mxu1 %v1360_v20  ;;  %v1544_v20 = vld [vmem:[#allocation7 + $0x14] sm:$0xf0]  ;;  %v1383_v63 = vld [vmem:[#allocation5 + $0x10] sm:$0xf] }
 0x151   : > { %1664 = vrcp.f32 %v436_v27  ;;  %v484_v31 = vmul.f32 %v1663_v29, %v437_v23  ;;  %v479_v36 = vand.u32 2147483648, %v436_v27  ;;  %v477_v40 = vand.u32 2147483647, %v436_v27  ;;  %v1569_v23 = vld [vmem:[#allocation7 + $0xe4] sm:$0xf] }
 0x152   : > { %1666 = vrcp.f32 %v435_v28  ;;  %v464_v41 = vand.u32 2147483648, %v435_v28  ;;  %v462_v43 = vand.u32 2147483647, %v435_v28  ;;  %vm473_vm8 = vweird.f32 %v436_v27  ;;  %v1536_v14 = vld [vmem:[#allocation5 + $0xd4] sm:$0xf0] }
 0x153   : > { %v485_v38 = vsub.f32 1.0, %v484_v31  ;;  %v480_v45 = vor.u32 1.1754944e-38, %v479_v36  ;;  %vm458_vm10 = vweird.f32 %v435_v28  ;;  %vm478_vm11 = vcmp.eq.f32.partialorder %v477_v40, 8.507059e+37  ;;  %v1568_v31 = vld [vmem:[#allocation7 + $0xd4] sm:$0xf0] }
 0x154   : > { %v465_v49 = vor.u32 1.1754944e-38, %v464_v41  ;;  %vm463_vm13 = vcmp.eq.f32.partialorder %v462_v43, 8.507059e+37  ;;  %vm489_vm14 = vweird.f32 %v1663_v29  ;;  %v1364_v26 = vor.u32 %v1569_v23, %v1361_v25  ;;  %v1567_v36 = vld [vmem:[#allocation7 + $0xd4] sm:$0xf]  ;;  %v1550_v40 = vld [vmem:[#allocation7 + $0x44] sm:$0xf0] }
 0x155   : > { %v486_v47 = vmul.f32 %v1663_v29, %v485_v38  ;;  %vm490_vm0 = vmor %vm488_vm15, %vm489_vm14  ;;  %v1279_v38 = vld [vmem:[#allocation7 + $0x40] sm:$0xf]  ;;  %v1256_v22 = vor.u32 %v1544_v20, %v1255_v19  ;;  %v1560_v23 = vld [vmem:[#allocation7 + $0x94] sm:$0xf0]  ;;  %v1480_v20 = vor.u32 %v1536_v14, %v1479_v11 }
 0x156   : > { %832 = vmatpush.bf16.msra.mxu3 %v1364_v26  ;;  %v1343_v41 = vld [vmem:[#allocation7 + $0xc0] sm:$0xf]  ;;  %v1280_v43 = vor.u32 %v1550_v40, %v1279_v38  ;;  %v1257_v25 = vld [vmem:[#allocation7 + $0x18] sm:$0xf0]  ;;  %v1320_v26 = vor.u32 %v1560_v23, %v1319_v21  ;;  %v1557_v40 = vld [vmem:[#allocation7 + $0x84] sm:$0xf] }
 0x157   : > { %v1665_v30 = vpop.eup %1664  ;;  %v487_v53 = vadd.f32 %v1663_v29, %v486_v47  ;;  %v1565_v47 = vld [vmem:[#allocation7 + $0xc4] sm:$0xf]  ;;  %v1481_v19 = vld [vmem:[#allocation5 + $0xd8] sm:$0xf0]  ;;  %v1518_v23 = vld [vmem:[#allocation5 + $0x44] sm:$0xf0] }
 0x158   : > { %v1667_v32 = vpop.eup %1666  ;;  %v469_v33 = vmul.f32 %v1665_v30, %v436_v27  ;;  %vm474_vm6 = vweird.f32 %v1665_v30  ;;  %v1287_v27 = vld [vmem:[#allocation7 + $0x50] sm:$0xf]  ;;  %v1512_v3 = vld [vmem:[#allocation5 + $0x14] sm:$0xf0]  ;;  %v1527_v14 = vld [vmem:[#allocation5 + $0x94] sm:$0xf] }
 0x159   : > { %v454_v34 = vmul.f32 %v1667_v32, %v435_v28  ;;  %vm459_vm7 = vweird.f32 %v1667_v32  ;;  %vm475_vm9 = vmor %vm473_vm8, %vm474_vm6  ;;  %v491_v56 = vsel %vm490_vm0, %v1663_v29, %v487_v53  ;;  %v1552_v28 = vld [vmem:[#allocation7 + $0x54] sm:$0xf0]  ;;  %v1351_v29 = vld [vmem:[#allocation7 + $0xd0] sm:$0xf] }
 0x15a   : > { %v470_v35 = vsub.f32 1.0, %v469_v33  ;;  %vm460_vm12 = vmor %vm458_vm10, %vm459_vm7  ;;  %v496_v58 = vsel %vm493_vm1, %v495_v57, %v491_v56  ;;  %v1289_v33 = vld [vmem:[#allocation7 + $0x58] sm:$0xf0]  ;;  %v1335_v53 = vld [vmem:[#allocation7 + $0xb0] sm:$0xf] }
 0x15b   : > { %v455_v37 = vsub.f32 1.0, %v454_v34  ;;  %v1352_v34 = vor.u32 %v1568_v31, %v1351_v29  ;;  %v1273_v57 = vld [vmem:[#allocation7 + $0x38] sm:$0xf0]  ;;  %v1336_v60 = vor.u32 %v1564_v54, %v1335_v53  ;;  %v1247_v31 = vld [vmem:[#allocation7] sm:$0xf] }
 0x15c   : > { %v471_v39 = vmul.f32 %v1665_v30, %v470_v35  ;;  %v1276_v61 = vor.u32 %v1547_v55, %v1273_v57  ;;  %v1321_v29 = vld [vmem:[#allocation7 + $0x98] sm:$0xf0]  ;;  %v1423_v54 = vld [vmem:[#allocation5 + $0x60] sm:$0xf]  ;;  %v1522_v55 = vld [vmem:[#allocation5 + $0x64] sm:$0xf0] }
 0x15d   : > { %v456_v42 = vmul.f32 %v1667_v32, %v455_v37  ;;  %v1353_v37 = vld [vmem:[#allocation7 + $0xd8] sm:$0xf0]  ;;  %807 = vmatpush.bf16.msra.mxu1 %v1352_v34  ;;  %v1424_v57 = vor.u32 %v1522_v55, %v1423_v54  ;;  %v1513_v55 = vld [vmem:[#allocation5 + $0x24] sm:$0xf] }
 0x15e   : > { %v472_v44 = vadd.f32 %v1665_v30, %v471_v39  ;;  %v1356_v39 = vor.u32 %v1567_v36, %v1353_v37  ;;  %v1541_v36 = vld [vmem:[#allocation7 + $0x4] sm:$0xf]  ;;  %v1249_v37 = vld [vmem:[#allocation7 + $0x8] sm:$0xf0]  ;;  %v1497_v53 = vld [vmem:[#allocation5 + $0xf8] sm:$0xf0] }
 0x15f   : > { %v457_v46 = vadd.f32 %v1667_v32, %v456_v42  ;;  %v1566_v42 = vld [vmem:[#allocation7 + $0xc4] sm:$0xf0] }
 0x160   : > { %v476_v48 = vsel %vm475_vm9, %v1665_v30, %v472_v44  ;;  %v1288_v30 = vor.u32 %v1552_v28, %v1287_v27  ;;  %v1344_v44 = vor.u32 %v1566_v42, %v1343_v41  ;;  %833 = vmatpush.bf16.msra.mxu3 %v1356_v39  ;;  %v1260_v27 = vor.u32 %v1543_v24, %v1257_v25  ;;  %v1559_v28 = vld [vmem:[#allocation7 + $0x94] sm:$0xf]  ;;  %v1313_v41 = vld [vmem:[#allocation7 + $0x88] sm:$0xf0]  ;;  %v1431_v42 = vld [vmem:[#allocation5 + $0x70] sm:$0xf] }
 0x161   : > { %v481_v50 = vsel %vm478_vm11, %v480_v45, %v476_v48  ;;  %v461_v51 = vsel %vm460_vm12, %v1667_v32, %v457_v46  ;;  %v1551_v32 = vld [vmem:[#allocation7 + $0x54] sm:$0xf]  ;;  %v1549_v45 = vld [vmem:[#allocation7 + $0x44] sm:$0xf]  ;;  %v1281_v46 = vld [vmem:[#allocation7 + $0x48] sm:$0xf0]  ;;  %v1252_v39 = vor.u32 %v1541_v36, %v1249_v37 }
 0x162   : > { %510 = vperm.xlu1 %1651, %v481_v50   ;;  %v466_v52 = vsel %vm463_vm13, %v465_v49, %v461_v51  ;;  %v1292_v35 = vor.u32 %v1551_v32, %v1289_v33  ;;  %794 = vmatpush.bf16.msra.mxu0 %v1288_v30  ;;  %v1284_v48 = vor.u32 %v1549_v45, %v1281_v46  ;;  %v1345_v49 = vld [vmem:[#allocation7 + $0xc8] sm:$0xf0]  ;;  %v1271_v50 = vld [vmem:[#allocation7 + $0x30] sm:$0xf]  ;;  %v1548_v51 = vld [vmem:[#allocation7 + $0x34] sm:$0xf0] }
 0x163   : > { %505 = vperm.xlu2 %1650, %v466_v52   ;;  %v1348_v52 = vor.u32 %v1565_v47, %v1345_v49  ;;  %v1272_v56 = vor.u32 %v1548_v51, %v1271_v50  ;;  %808 = vmatpush.bf16.msra.mxu1 %v1344_v44  ;;  %v1324_v30 = vor.u32 %v1559_v28, %v1321_v29  ;;  %v1542_v32 = vld [vmem:[#allocation7 + $0x4] sm:$0xf0]  ;;  %v1311_v33 = vld [vmem:[#allocation7 + $0x80] sm:$0xf]  ;;  %v1495_v44 = vld [vmem:[#allocation5 + $0xf0] sm:$0xf] }
 0x164   : > { %820 = vmatpush.bf16.msra.mxu2 %v1292_v35  ;;  %v1248_v34 = vor.u32 %v1542_v32, %v1247_v31  ;;  %v1558_v35 = vld [vmem:[#allocation7 + $0x84] sm:$0xf0]  ;;  %v1540_v45 = vld [vmem:[#allocation5 + $0xf4] sm:$0xf0]  ;;  %v1316_v46 = vor.u32 %v1557_v40, %v1313_v41  ;;  %v1523_v49 = vld [vmem:[#allocation5 + $0x74] sm:$0xf] }
 0x165   : > { %834 = vmatpush.bf16.msra.mxu3 %v1348_v52  ;;  %v1312_v38 = vor.u32 %v1558_v35, %v1311_v33  ;;  %v1433_v50 = vld [vmem:[#allocation5 + $0x78] sm:$0xf0]  ;;  %v1539_v51 = vld [vmem:[#allocation5 + $0xf4] sm:$0xf]  ;;  %v1471_v24 = vld [vmem:[#allocation5 + $0xc0] sm:$0xf] }
 0x166   : > { %795 = vmatpush.bf16.msra.mxu0 %v1280_v43  ;;  %v1524_v43 = vld [vmem:[#allocation5 + $0x74] sm:$0xf0]  ;;  %v1436_v52 = vor.u32 %v1523_v49, %v1433_v50  ;;  %v1409_v28 = vld [vmem:[#allocation5 + $0x48] sm:$0xf0]  ;;  %v1533_v29 = vld [vmem:[#allocation5 + $0xc4] sm:$0xf] }
 0x167   : > { %809 = vmatpush.bf16.msra.mxu1 %v1336_v60  ;;  %v1432_v47 = vor.u32 %v1524_v43, %v1431_v42  ;;  %v1521_v60 = vld [vmem:[#allocation5 + $0x64] sm:$0xf]  ;;  %v1399_v36 = vld [vmem:[#allocation5 + $0x30] sm:$0xf]  ;;  %v1516_v37 = vld [vmem:[#allocation5 + $0x34] sm:$0xf0] }
 0x168   : > { %821 = vmatpush.bf16.msra.mxu2 %v1284_v48  ;;  %v1496_v48 = vor.u32 %v1540_v45, %v1495_v44  ;;  %v1400_v40 = vor.u32 %v1516_v37, %v1399_v36  ;;  %v1532_v41 = vld [vmem:[#allocation5 + $0xb4] sm:$0xf0]  ;;  %v1515_v42 = vld [vmem:[#allocation5 + $0x34] sm:$0xf]  ;;  %v1401_v43 = vld [vmem:[#allocation5 + $0x38] sm:$0xf0] }
 0x169   : > { %v1404_v45 = vor.u32 %v1515_v42, %v1401_v43  ;;  %v1514_v50 = vld [vmem:[#allocation5 + $0x24] sm:$0xf0] }
 0x16a   : > { %796 = vmatpush.bf16.msra.mxu0 %v1272_v56  ;;  %v1500_v56 = vor.u32 %v1539_v51, %v1497_v53  ;;  %v1455_v51 = vld [vmem:[#allocation5 + $0xa0] sm:$0xf] }
 0x16b   : > { %515 = vperm.xlu2 %1650, %v496_v58   ;;  %v1563_v58 = vld [vmem:[#allocation7 + $0xb4] sm:$0xf]  ;;  %810 = vmatpush.bf16.msra.mxu1 %v1328_v16  ;;  %v1417_v16 = vld [vmem:[#allocation5 + $0x58] sm:$0xf0] }
 0x16c   : > { %v1340_v4 = vor.u32 %v1563_v58, %v1337_v59  ;;  %822 = vmatpush.bf16.msra.mxu2 %v1276_v61  ;;  %v1487_v58 = vld [vmem:[#allocation5 + $0xe0] sm:$0xf]  ;;  %v1538_v59 = vld [vmem:[#allocation5 + $0xe4] sm:$0xf0] }
 0x16d   : > { %v1488_v61 = vor.u32 %v1538_v59, %v1487_v58 }
 0x16e   : > { %835 = vmatpush.bf16.msra.mxu3 %v1340_v4  ;;  %797 = vmatpush.bf16.msra.mxu0 %v1264_v15  ;;  %v1428_v4 = vor.u32 %v1521_v60, %v1425_v62  ;;  %v1519_v15 = vld [vmem:[#allocation5 + $0x54] sm:$0xf] }
 0x16f   : > { %811 = vmatpush.bf16.msra.mxu1 %v1320_v26  ;;  %v1420_v21 = vor.u32 %v1519_v15, %v1417_v16  ;;  %v1534_v26 = vld [vmem:[#allocation5 + $0xc4] sm:$0xf0]  ;;  %v1449_v15 = vld [vmem:[#allocation5 + $0x98] sm:$0xf0] }
 0x170   : > { %823 = vmatpush.bf16.msra.mxu2 %v1268_v17  ;;  %v1416_v17 = vor.u32 %v1520_v10, %v1415_v9  ;;  %v1472_v33 = vor.u32 %v1534_v26, %v1471_v24  ;;  %v1528_v9 = vld [vmem:[#allocation5 + $0x94] sm:$0xf0]  ;;  %v1511_v10 = vld [vmem:[#allocation5 + $0x14] sm:$0xf] }
 0x172   : > { %836 = vmatpush.bf16.msra.mxu3 %v1332_v18  ;;  %798 = vmatpush.bf16.msra.mxu0 %v1256_v22  ;;  %v1535_v18 = vld [vmem:[#allocation5 + $0xd4] sm:$0xf]  ;;  %v1407_v22 = vld [vmem:[#allocation5 + $0x40] sm:$0xf] }
 0x173   : > { %812 = vmatpush.bf16.msra.mxu1 %v1312_v38  ;;  %v1484_v25 = vor.u32 %v1535_v18, %v1481_v19  ;;  %v1408_v32 = vor.u32 %v1518_v23, %v1407_v22  ;;  %v1463_v38 = vld [vmem:[#allocation5 + $0xb0] sm:$0xf]  ;;  %v1384_v19 = vor.u32 %v1512_v3, %v1383_v63 }
 0x174   : > { %824 = vmatpush.bf16.msra.mxu2 %v1260_v27  ;;  %v1517_v27 = vld [vmem:[#allocation5 + $0x44] sm:$0xf]  ;;  %v1464_v44 = vor.u32 %v1532_v41, %v1463_v38 }
 0x176   : > { %837 = vmatpush.bf16.msra.mxu3 %v1324_v30  ;;  %799 = vmatpush.bf16.msra.mxu0 %v1248_v34  ;;  %v1473_v30 = vld [vmem:[#allocation5 + $0xc8] sm:$0xf0]  ;;  %v1412_v34 = vor.u32 %v1517_v27, %v1409_v28  ;;  %v1452_v27 = vor.u32 %v1527_v14, %v1449_v15  ;;  %v1526_v28 = vld [vmem:[#allocation5 + $0x84] sm:$0xf0] }
 0x177   : > { %1017 = vmatpush.bf16.msrb.mxu1 %v1496_v48  ;;  %v1476_v35 = vor.u32 %v1533_v29, %v1473_v30  ;;  %v1391_v48 = vld [vmem:[#allocation5 + $0x20] sm:$0xf]  ;;  %v1509_v29 = vld [vmem:[#allocation5 + $0x4] sm:$0xf]  ;;  %v1377_v30 = vld [vmem:[#allocation5 + $0x8] sm:$0xf0] }
 0x178   : > { %825 = vmatpush.bf16.msra.mxu2 %v1252_v39  ;;  %v1392_v60 = vor.u32 %v1514_v50, %v1391_v48  ;;  %v1380_v38 = vor.u32 %v1509_v29, %v1377_v30 }
 0x17a   : > { %838 = vmatpush.bf16.msra.mxu3 %v1316_v46  ;;  %1004 = vmatpush.bf16.msrb.mxu0 %v1432_v47  ;;  %v1531_v46 = vld [vmem:[#allocation5 + $0xb4] sm:$0xf]  ;;  %v1465_v47 = vld [vmem:[#allocation5 + $0xb8] sm:$0xf0] }
 0x17b   : > { %1018 = vmatpush.bf16.msrb.mxu1 %v1488_v61  ;;  %v1468_v49 = vor.u32 %v1531_v46, %v1465_v47  ;;  %v1457_v61 = vld [vmem:[#allocation5 + $0xa8] sm:$0xf0] }
 0x17c   : > { %1030 = vmatpush.bf16.msrb.mxu2 %v1436_v52  ;;  %v1530_v52 = vld [vmem:[#allocation5 + $0xa4] sm:$0xf0] }
 0x17d   : > { %v1456_v62 = vor.u32 %v1530_v52, %v1455_v51 }
 0x17e   : > { %1043 = vmatpush.bf16.msrb.mxu3 %v1500_v56  ;;  %1005 = vmatpush.bf16.msrb.mxu0 %v1424_v57  ;;  %v1393_v56 = vld [vmem:[#allocation5 + $0x28] sm:$0xf0]  ;;  %v1529_v57 = vld [vmem:[#allocation5 + $0xa4] sm:$0xf] }
 0x17f   : > { %1019 = vmatpush.bf16.msrb.mxu1 %v1480_v20  ;;  %v1375_v20 = vld [vmem:[#allocation5] sm:$0xf] }
 0x180   : > { %1031 = vmatpush.bf16.msrb.mxu2 %v1428_v4 }
 0x182   : > { %1044 = vmatpush.bf16.msrb.mxu3 %v1492_v6  ;;  %1006 = vmatpush.bf16.msrb.mxu0 %v1416_v17  ;;  %v1460_v6 = vor.u32 %v1529_v57, %v1457_v61 }
 0x183   : > { %1020 = vmatpush.bf16.msrb.mxu1 %v1472_v33 }
 0x184   : > { %1032 = vmatpush.bf16.msrb.mxu2 %v1420_v21  ;;  %v1510_v21 = vld [vmem:[#allocation5 + $0x4] sm:$0xf0] }
 0x186   : > { %1045 = vmatpush.bf16.msrb.mxu3 %v1484_v25  ;;  %1007 = vmatpush.bf16.msrb.mxu0 %v1408_v32  ;;  %v1439_v25 = vld [vmem:[#allocation5 + $0x80] sm:$0xf]  ;;  %v1441_v32 = vld [vmem:[#allocation5 + $0x88] sm:$0xf0] }
 0x187   : > { %1021 = vmatpush.bf16.msrb.mxu1 %v1464_v44  ;;  %v1440_v37 = vor.u32 %v1526_v28, %v1439_v25 }
 0x188   : > { %1033 = vmatpush.bf16.msrb.mxu2 %v1412_v34 }
 0x18a   : > { %1046 = vmatpush.bf16.msrb.mxu3 %v1476_v35  ;;  %1008 = vmatpush.bf16.msrb.mxu0 %v1400_v40 }
 0x18b   : > { %1022 = vmatpush.bf16.msrb.mxu1 %v1456_v62 }
 0x18c   : > { %1034 = vmatpush.bf16.msrb.mxu2 %v1404_v45 }
 0x18e   : > { %1047 = vmatpush.bf16.msrb.mxu3 %v1468_v49  ;;  %1009 = vmatpush.bf16.msrb.mxu0 %v1392_v60 }
 0x192   : > { %1048 = vmatpush.bf16.msrb.mxu3 %v1460_v6  ;;  %1010 = vmatpush.bf16.msrb.mxu0 %v1384_v19 }
 0x196   : > { %1049 = vmatpush.bf16.msrb.mxu3 %v1452_v27 }
 0x1bd   : > { %v506_v31 = vpop.permute.xlu2 %505  ;;  %v501_v39 = vpop.permute.xlu0 %500 }
 0x1be   : > { %v2079_v53 = vmul.f32 %v506_v31, %v2017_v7  ;;  %v2082_v54 = vmul.f32 %v501_v39, %v1999_v0  ;;  %v2085_v58 = vmul.f32 %v506_v31, %v2020_v8  ;;  %v2088_v59 = vmul.f32 %v501_v39, %v2002_v1  ;;  %v1447_v0 = vld [vmem:[#allocation5 + $0x90] sm:$0xf]  ;;  %v1385_v8 = vld [vmem:[#allocation5 + $0x18] sm:$0xf0] }
 0x1bf   : > { %v1396_v7 = vor.u32 %v1513_v55, %v1393_v56  ;;  %v1448_v23 = vor.u32 %v1528_v9, %v1447_v0  ;;  %v1388_v24 = vor.u32 %v1511_v10, %v1385_v8  ;;  %v1376_v31 = vor.u32 %v1510_v21, %v1375_v20 }
 0x1c0   : > { %v544_v1 = vadd.f32 %v2079_v53, %v2082_v54  ;;  %v553_v16 = vadd.f32 %v2085_v58, %v2088_v59 }
 0x1c1   : > { %1035 = vmatpush.bf16.msrb.mxu2 %v1396_v7  ;;  %1023 = vmatpush.bf16.msrb.mxu1 %v1448_v23 }
 0x1c2   : > { %1011 = vmatpush.bf16.msrb.mxu0 %v1376_v31 }
 0x1c5   : > { %v516_v4 = vpop.permute.xlu2 %515  ;;  %1036 = vmatpush.bf16.msrb.mxu2 %v1388_v24  ;;  %1024 = vmatpush.bf16.msrb.mxu1 %v1440_v37 }
 0x1c6   : > { %v2101_v22 = vmul.f32 %v516_v4, %v2029_v12  ;;  %v2104_v26 = vmul.f32 %v516_v4, %v2032_v13  ;;  %v1525_v12 = vld [vmem:[#allocation5 + $0x84] sm:$0xf] }
 0x1c7   : > { %v1444_v42 = vor.u32 %v1525_v12, %v1441_v32 }
 0x1c8   : > { %v527_v36 = vmax.f32 %v2079_v53, %v2101_v22  ;;  %v536_v39 = vmax.f32 %v2085_v58, %v2104_v26 }
 0x1c9   : > { %1037 = vmatpush.bf16.msrb.mxu2 %v1380_v38  ;;  %1050 = vmatpush.bf16.msrb.mxu3 %v1444_v42 }
 0x1d4   : > { %v511_v11 = vpop.permute.xlu1 %510 }
 0x1d5   : > { %v2095_v17 = vmul.f32 %v511_v11, %v2005_v2  ;;  %v2098_v18 = vmul.f32 %v511_v11, %v2012_v5 }
 0x1d7   : > { %v545_v2 = vadd.f32 %v544_v1, %v2095_v17  ;;  %v554_v5 = vadd.f32 %v553_v16, %v2098_v18  ;;  %v526_v33 = vmax.f32 %v2082_v54, %v2095_v17  ;;  %v535_v34 = vmax.f32 %v2088_v59, %v2098_v18 }
 0x1d9   : > { %v546_v13 = vadd.f32 %v545_v2, %v2101_v22  ;;  %v555_v35 = vadd.f32 %v554_v5, %v2104_v26  ;;  %v528_v43 = vmax.f32 %v526_v33, %v527_v36  ;;  %v537_v44 = vmax.f32 %v535_v34, %v536_v39 }
 0x1db   : > { %v547_v40 = vrot.slane %v546_v13, 4  ;;  %v556_v41 = vrot.slane %v555_v35, 4  ;;  %v529_v49 = vrot.slane %v528_v43, 4  ;;  %v538_v50 = vrot.slane %v537_v44, 4 }
 0x1dd   : > { %v548_v45 = vadd.f32 %v547_v40, %v546_v13  ;;  %v557_v46 = vadd.f32 %v556_v41, %v555_v35  ;;  %v530_v61 = vmax.f32 %v528_v43, %v529_v49  ;;  %v539_v62 = vmax.f32 %v537_v44, %v538_v50 }
 0x1df   : > { %v549_v47 = vrot.slane %v548_v45, 2  ;;  %v558_v48 = vrot.slane %v557_v46, 2  ;;  %v531_v4 = vrot.slane %v530_v61, 2  ;;  %v540_v6 = vrot.slane %v539_v62, 2 }
 0x1e1   : > { %v550_v51 = vadd.f32 %v549_v47, %v548_v45  ;;  %v559_v52 = vadd.f32 %v558_v48, %v557_v46  ;;  %v532_v9 = vmax.f32 %v530_v61, %v531_v4  ;;  %v541_v10 = vmax.f32 %v539_v62, %v540_v6 }
 0x1e3   : > { %v551_v55 = vrot.slane %v550_v51, 1  ;;  %v560_v56 = vrot.slane %v559_v52, 1  ;;  %v533_v8 = vrot.slane %v532_v9, 1  ;;  %v542_v1 = vrot.slane %v541_v10, 1 }
 0x1e5   : > { %v552_v57 = vadd.f32 %v551_v55, %v550_v51  ;;  %v561_v60 = vadd.f32 %v560_v56, %v559_v52  ;;  %v534_v11 = vmax.f32 %v532_v9, %v533_v8  ;;  %v543_v14 = vmax.f32 %v541_v10, %v542_v1  ;;  %v1676_v8 = vld [vmem:[%s1988_s16] sm:$0xff] }
 0x1e7   : > { %v562_v7 = vmul.f32 0.03125, %v552_v57  ;;  %v563_v63 = vmul.f32 0.03125, %v561_v60  ;;  %v628_v15 = vpack.c.bf16 %v534_v11, %v534_v11  ;;  %v629_v16 = vpack.c.bf16 %v543_v14, %v543_v14  ;;  %v1677_v11 = vld [vmem:[%s1988_s16 + $0x10] sm:$0xff] }
 0x1e9   : > { %v630_v3 = vpack.c.bf16 %v562_v7, %v562_v7  ;;  %v631_v0 = vpack.c.bf16 %v563_v63, %v563_v63 }
 0x1eb   : > { %800 = vmatmul.bf16.vlgmr.msra.gmra.mxu0 %v630_v3  ;;  %813 = vmatmul.bf16.vlgmr.msra.gmra.mxu1 %v631_v0 }
 0x1ec   : > { %826 = vmatmul.bf16.vlgmr.msra.gmra.mxu2 %v630_v3  ;;  %839 = vmatmul.bf16.vlgmr.msra.gmra.mxu3 %v631_v0 }
 0x1fb   : > { %1012 = vmatmul.bf16.vlgmr.msrb.gmra.mxu0 %v628_v15  ;;  %1025 = vmatmul.bf16.vlgmr.msrb.gmra.mxu1 %v629_v16 }
 0x1fc   : > { %1038 = vmatmul.bf16.vlgmr.msrb.gmra.mxu2 %v628_v15  ;;  %1051 = vmatmul.bf16.vlgmr.msrb.gmra.mxu3 %v629_v16  ;;  %v1678_v15 = vld [vmem:[%s1988_s16 + $0x20] sm:$0xff] }
 0x268   : > { %v801_v19 = vpop.f32.mrf.mxu0  ;;  %v814_v20 = vpop.f32.mrf.mxu1 }
 0x269   : > { %v815_v2 = vadd.f32 %v814_v20, %v801_v19  ;;  %v1679_v20 = vld [vmem:[%s1988_s16 + $0x30] sm:$0xff] }
 0x26f   : > { %v827_v21 = vpop.f32.mrf.mxu2  ;;  %v840_v23 = vpop.f32.mrf.mxu3 }
 0x270   : > { %v803_v24 = vpop.f32.mrf.mxu0  ;;  %v816_v25 = vpop.f32.mrf.mxu1  ;;  %v841_v32 = vadd.f32 %v840_v23, %v827_v21 }
 0x277   : > { %v829_v5 = vpop.f32.mrf.mxu2  ;;  %v842_v27 = vpop.f32.mrf.mxu3 }
 0x278   : > { %v1013_v28 = vpop.f32.mrf.mxu0  ;;  %v1026_v29 = vpop.f32.mrf.mxu1  ;;  %v1681_v27 = vld [vmem:[%s1988_s16 + $0x18] sm:$0xff] }
 0x279   : > { %v1014_v30 = vadd.f32 %v1013_v28, %v815_v2  ;;  %v1680_v2 = vld [vmem:[%s1988_s16 + $0x8] sm:$0xff] }
 0x27b   : > { %v1027_v31 = vadd.f32 %v1026_v29, %v1014_v30  ;;  %v1682_v29 = vld [vmem:[%s1988_s16 + $0x28] sm:$0xff] }
 0x27d   : > { %v1501_v12 = vmul.f32 -1.442695, %v1027_v31  ;;  %v1683_v31 = vld [vmem:[%s1988_s16 + $0x38] sm:$0xff] }
 0x27f   : > { %1668 = vpow2.f32 %v1501_v12  ;;  %v1039_v33 = vpop.f32.mrf.mxu2  ;;  %v1052_v34 = vpop.f32.mrf.mxu3 }
 0x280   : > { %v1040_v13 = vadd.f32 %v1039_v33, %v841_v32  ;;  %v1015_v35 = vpop.f32.mrf.mxu0  ;;  %v1028_v36 = vpop.f32.mrf.mxu1 }
 0x282   : > { %v1053_v37 = vadd.f32 %v1052_v34, %v1040_v13 }
 0x284   : > { %v1502_v38 = vmul.f32 -1.442695, %v1053_v37 }
 0x285   : > { %v1669_v39 = vpop.eup %1668 }
 0x286   : > { %v1062_v40 = vadd.f32 1.0, %v1669_v39  ;;  %1670 = vpow2.f32 %v1502_v38 }
 0x287   : > { %v1041_v41 = vpop.f32.mrf.mxu2  ;;  %v1054_v42 = vpop.f32.mrf.mxu3 }
 0x288   : > { %1672 = vrcp.f32 %v1062_v40  ;;  %v1075_v48 = vand.u32 2147483648, %v1062_v40  ;;  %v1073_v50 = vand.u32 2147483647, %v1062_v40  ;;  %vm1069_vm3 = vweird.f32 %v1062_v40 }
 0x28a   : > { %v1076_v55 = vor.u32 1.1754944e-38, %v1075_v48  ;;  %vm1074_vm5 = vcmp.eq.f32.partialorder %v1073_v50, 8.507059e+37 }
 0x28c   : > { %v1671_v43 = vpop.eup %1670 }
 0x28d   : > { %v1063_v44 = vadd.f32 1.0, %v1671_v43 }
 0x28e   : > { %v1673_v45 = vpop.eup %1672 }
 0x28f   : > { %v1065_v46 = vmul.f32 %v1673_v45, %v1062_v40  ;;  %1674 = vrcp.f32 %v1063_v44  ;;  %vm1070_vm2 = vweird.f32 %v1673_v45  ;;  %v1090_v7 = vand.u32 2147483648, %v1063_v44 }
 0x290   : > { %vm1071_vm4 = vmor %vm1069_vm3, %vm1070_vm2  ;;  %v1088_v3 = vand.u32 2147483647, %v1063_v44  ;;  %vm1084_vm7 = vweird.f32 %v1063_v44 }
 0x291   : > { %v1066_v47 = vsub.f32 1.0, %v1065_v46  ;;  %v1091_v19 = vor.u32 1.1754944e-38, %v1090_v7 }
 0x292   : > { %vm1089_vm9 = vcmp.eq.f32.partialorder %v1088_v3, 8.507059e+37 }
 0x293   : > { %v1067_v49 = vmul.f32 %v1673_v45, %v1066_v47 }
 0x295   : > { %v1675_v51 = vpop.eup %1674  ;;  %v1068_v52 = vadd.f32 %v1673_v45, %v1067_v49 }
 0x296   : > { %v1080_v56 = vmul.f32 %v1675_v51, %v1063_v44  ;;  %vm1085_vm6 = vweird.f32 %v1675_v51 }
 0x297   : > { %v1072_v57 = vsel %vm1071_vm4, %v1673_v45, %v1068_v52  ;;  %vm1086_vm8 = vmor %vm1084_vm7, %vm1085_vm6 }
 0x298   : > { %v1077_v60 = vsel %vm1074_vm5, %v1076_v55, %v1072_v57  ;;  %v1081_v61 = vsub.f32 1.0, %v1080_v56 }
 0x299   : > { %v1094_v62 = vperm.slane %v1077_v60, 0 }
 0x29a   : > { %v1082_v63 = vmul.f32 %v1675_v51, %v1081_v61 }
 0x29b   : > { %v1096_v0 = vmul.f32 %v1094_v62, %v2082_v54  ;;  %v1098_v4 = vmul.f32 %v1094_v62, %v2079_v53  ;;  %v1100_v6 = vmul.f32 %v1094_v62, %v2095_v17  ;;  %v1102_v9 = vmul.f32 %v1094_v62, %v2101_v22 }
 0x29c   : > { %v1083_v10 = vadd.f32 %v1675_v51, %v1082_v63 }
 0x29d   : > { %v1104_v1 = vadd.f32 %v1676_v8, %v1096_v0  ;;  %v1106_v14 = vadd.f32 %v1677_v11, %v1098_v4  ;;  %v1108_v16 = vadd.f32 %v1678_v15, %v1100_v6  ;;  %v1110_v54 = vadd.f32 %v1679_v20, %v1102_v9 }
 0x29e   : > { %v1087_v21 = vsel %vm1086_vm8, %v1675_v51, %v1083_v10 }
 0x29f   : > { %1112 = vst [vmem:[%s277_s12] sm:$0xff] %v1104_v1  ;;  %v1092_v53 = vsel %vm1089_vm9, %v1091_v19, %v1087_v21 }
 0x2a0   : > { %1114 = vst [vmem:[%s277_s12 + $0x10] sm:$0xff] %v1106_v14  ;;  %v1095_v17 = vperm.slane %v1092_v53, 0 }
 0x2a1   : > { %1116 = vst [vmem:[%s277_s12 + $0x20] sm:$0xff] %v1108_v16 }
 0x2a2   : > { %1118 = vst [vmem:[%s277_s12 + $0x30] sm:$0xff] %v1110_v54  ;;  %v1097_v22 = vmul.f32 %v1095_v17, %v2088_v59  ;;  %v1099_v23 = vmul.f32 %v1095_v17, %v2085_v58  ;;  %v1101_v24 = vmul.f32 %v1095_v17, %v2098_v18  ;;  %v1103_v25 = vmul.f32 %v1095_v17, %v2104_v26 }
 0x2a4   : > { %v1105_v5 = vadd.f32 %v1680_v2, %v1097_v22  ;;  %v1107_v28 = vadd.f32 %v1681_v27, %v1099_v23  ;;  %v1109_v30 = vadd.f32 %v1682_v29, %v1101_v24  ;;  %v1111_v12 = vadd.f32 %v1683_v31, %v1103_v25 }
 0x2a6   : > { %1113 = vst [vmem:[%s277_s12 + $0x8] sm:$0xff] %v1105_v5 }
 0x2a7   : > { %1115 = vst [vmem:[%s277_s12 + $0x18] sm:$0xff] %v1107_v28 }
 0x2a8   : > { %1117 = vst [vmem:[%s277_s12 + $0x28] sm:$0xff] %v1109_v30 }
 0x2a9   : > { %1119 = vst [vmem:[%s277_s12 + $0x38] sm:$0xff] %v1111_v12 }
 0x2aa   : > { %1801 = shalt.err (!%p1798_p10)
}
 0x2ab   : > { %s1854_s8 = smov 256   ;;  %s1855_s10 = smov 16  }
 0x2ac   : > { %1584 = dma.vmem_to_hbm [thread:$0]  (%p1952_p3), %s1134_s22, 1024, %s1136_s13, %s1121_s6, %s1854_s8, %s1854_s8, %s1855_s10  }
 0x2ad PF: > { %s1150_s11 = sand.u32 1, %s1832_s18   ;;  %p2180_p12 = scmp.ge.s32.totalorder %s1844_s21, 2 }
 0x2ae   : > { %s1151_s12 = scalar_lea.sflag [#allocation4], %s1150_s11 }
 0x2af   : > { %p1598_p13 = pnand %p2180_p12, %p1921_p6 }
 0x2b1   : > { %p1599_p0 = pneg %p1598_p13 }
 0x2b3   : > { %1827 = dma.done.wait (%p1599_p0), %s1151_s12, 1024  }
 0x2b4   : > { %1829 = vsyncadd (%p1599_p0), %s1151_s12, 4294966272  ;;  %p19_p5 = scmp.ge.s32.totalorder %s1942_s14, 4   ;;  %s2181_s18 = smov %s1836_s19 }
 0x2b5   : > { %s2182_s19 = smov %s1840_s20  ;;  %s2183_s20 = smov %s1958_s23 }
 0x2b6   : > { %s2184_s21 = smov %s1942_s14  ;;  %21 = sbr.rel (!%p19_p5) target bundleno = 6 (0x6), region = 93 }
 0x2bb   :  { %1157 = vsyncpa [#allocation3], 1 }
 0x2bc   :  { %1159 = vsyncpa [#allocation3 + $0x1], 1 }
 0x2bd   :  { %1160 = vsyncpa [#allocation6], 1 }
 0x2be   :  { %1161 = vsyncpa [#allocation4], 1 }
 0x2bf   :  { %1163 = vsyncpa [#allocation4 + $0x1], 1 }

</bundles_post_ra>
